<compile_context>
chip_gen: v5e
topology: v5e:2x2
jax: 0.10.0
libtpu: 0.0.40
codegen_flags: <defaults>
</compile_context>

<pallas_src>
import functools

import jax
import jax.numpy as jnp
from jax import lax
from jax.experimental import pallas as pl
from jax.experimental.pallas import tpu as pltpu


def _rollout_kernel(s0_ref, wfuse_ref, b1_ref, w2_ref, b2_ref, bmat_ref,
                    out_ref, *, T):
    B, D = s0_ref.shape
    Hp = b1_ref.shape[1]          # hidden width, lane-padded to a 128 multiple
    A = b2_ref.shape[1]
    rwcol = Hp + D                # reward-weight column inside the fused matmul

    # Packed output slab lane offsets (episode-major, lane-dense writeback).
    soff = 0
    poff = T * D
    roff = poff + T * A
    aoff = roff + T

    # Parameters: load once, stay resident across the whole rollout.
    wfuse = wfuse_ref[...]        # [D, Hp + D + 1] == [W1_pad | A_mat | rw^T]
    b1 = b1_ref[...]              # [1, Hp]
    w2 = w2_ref[...]              # [Hp, A]
    b2 = b2_ref[...]              # [1, A]

    if A == 2:
        # Pure-VPU env step: pick the bmat row with a compare/select, no
        # MXU push and no cross-lane argmax reduces on the serial chain.
        brow0 = jnp.broadcast_to(bmat_ref[0:1, :], (B, D))
        brow1 = jnp.broadcast_to(bmat_ref[1:2, :], (B, D))
    else:
        # TODO(synk): generalize to a select tree for A <= 8; argmax fallback.
        bmat = bmat_ref[...]
        # Hoisted once: JAX does not CSE broadcast_in_dim across iterations.
        idx = lax.broadcasted_iota(jnp.int32, (B, A), 1)

    # Zero any unused pad lanes of the output slab (none at the demo shapes).
    pad = out_ref.shape[1] - (aoff + T)
    if pad > 0:
        out_ref[:, aoff + T:] = jnp.zeros((B, pad), jnp.float32)

    s = s0_ref[...]
    # Fully unrolled time loop (T is small and static).
    # TODO(synk): switch to lax.fori_loop carrying s for long horizons.
    for t in range(T):
        # One fused MXU push with s as LHS: policy layer-1 pre-activation,
        # env dynamics s @ A_mat, and the previous step's reward rw . s.
        z = jnp.dot(s, wfuse, preferred_element_type=jnp.float32)   # [B, Hp+D+1]

        # reward(t-1) = rw . s_next(t-1) = rw . s(t): a free column of z.
        if t > 0:
            out_ref[:, roff + t - 1:roff + t] = z[:, rwcol:rwcol + 1]

        h = jnp.maximum(z[:, :Hp] + b1, 0.0)                        # [B, Hp]
        dyn = z[:, Hp:Hp + D]                                       # [B, D]
        logits = jnp.dot(h, w2, preferred_element_type=jnp.float32) + b2   # [B, A]

        # Record trajectory directly into the packed episode-major slab.
        out_ref[:, soff + t * D:soff + (t + 1) * D] = s
        out_ref[:, poff + t * A:poff + (t + 1) * A] = logits

        if A == 2:
            # Greedy action; strict '>' ties break to index 0 like jnp.argmax.
            take1 = logits[:, 1:2] > logits[:, 0:1]                 # [B, 1]
            out_ref[:, aoff + t:aoff + t + 1] = take1.astype(jnp.float32)
            bsel = jnp.where(jnp.broadcast_to(take1, (B, D)), brow1, brow0)
        else:
            mx = jnp.max(logits, axis=-1, keepdims=True)
            action = jnp.min(jnp.where(logits == mx, idx, A),
                             axis=-1, keepdims=True)                # [B, 1]
            out_ref[:, aoff + t:aoff + t + 1] = action.astype(jnp.float32)
            onehot = (idx == action).astype(jnp.float32)
            bsel = jnp.dot(onehot, bmat, preferred_element_type=jnp.float32)

        # Deterministic env.step: linear dynamics + tanh squash.
        s = jnp.tanh(dyn + bsel)

    # Final reward needs one extra fused matmul (only the rw column is used).
    z = jnp.dot(s, wfuse, preferred_element_type=jnp.float32)
    out_ref[:, roff + T - 1:roff + T] = z[:, rwcol:rwcol + 1]


def simulator_forward(s0, w1, b1, w2, b2, amat, bmat, rw, *, horizon):
    """Roll out `batch_size = s0.shape[0]` episodes of length `horizon`.

    The rollout is latency-bound on the per-step dependency chain, so the
    episode batch is padded only to the f32 sublane tile (multiple of 8) and
    everything runs in a single grid step.
    """
    B, D = s0.shape
    H = w1.shape[1]
    A = w2.shape[1]
    T = horizon

    # Sublane-tile pad only (no MXU-fill padding: it was pure wasted work).
    B_pad = max(8, ((B + 7) // 8) * 8)
    s0_p = jnp.zeros((B_pad, D), jnp.float32).at[:B].set(s0)

    # Lane-align the fused-weight split: pad the hidden width to a 128
    # multiple so z[:, :Hp] / z[:, Hp:] fall on vreg boundaries (the extra
    # zero columns are free on the MXU), and fold the reward weights in as
    # one more column of the fused matmul.
    Hp = ((H + 127) // 128) * 128
    w1_p = jnp.zeros((D, Hp), jnp.float32).at[:, :H].set(w1)
    b1_p = jnp.zeros((1, Hp), jnp.float32).at[:, :H].set(b1)
    w2_p = jnp.zeros((Hp, A), jnp.float32).at[:H, :].set(w2)
    wfuse = jnp.concatenate([w1_p, amat, jnp.transpose(rw, (1, 0))], axis=1)  # [D, Hp+D+1]

    # Single packed, lane-dense output slab: [states | policies | rewards | actions].
    soff, poff = 0, T * D
    roff = poff + T * A
    aoff = roff + T
    W_out = max(128, ((aoff + T + 127) // 128) * 128)

    # TODO(synk): enable a CORE_PARALLEL / core_map split over episodes on
    # v7x only when the real batch is large enough to fill both TensorCores.
    grid = (1,)

    def full(i):
        return (0, 0)

    slab = pl.pallas_call(
        functools.partial(_rollout_kernel, T=T),
        out_shape=jax.ShapeDtypeStruct((B_pad, W_out), jnp.float32),
        grid=grid,
        in_specs=[
            pl.BlockSpec((B_pad, D), full),          # s0
            pl.BlockSpec((D, Hp + D + 1), full),     # fused [W1_pad | A_mat | rw^T]
            pl.BlockSpec((1, Hp), full),             # b1 (lane-padded)
            pl.BlockSpec((Hp, A), full),             # w2 (zero-padded rows)
            pl.BlockSpec((1, A), full),              # b2
            pl.BlockSpec((A, D), full),              # B_mat
        ],
        out_specs=pl.BlockSpec((B_pad, W_out), full),
        compiler_params=pltpu.CompilerParams(
            dimension_semantics=("arbitrary",)),
    )(s0_p, wfuse, b1_p, w2_p, b2, bmat)

    # cache = per-episode trajectories (episode-major). Slices / reshapes are
    # cheap row-major views; padded episode rows are dropped.
    return {
        "state": slab[:B, soff:soff + T * D].reshape(B, T, D),   # [B, T, D]
        "policy": slab[:B, poff:poff + T * A].reshape(B, T, A),  # [B, T, A]
        "reward": slab[:B, roff:roff + T],                       # [B, T]
        "action": slab[:B, aoff:aoff + T].astype(jnp.int32),     # [B, T]
    }


def _reference_rollout(s0, w1, b1, w2, b2, amat, bmat, rw, horizon):
    """Pure-JAX reference of the same fixed-horizon rollout."""
    hp = lax.Precision.HIGHEST
    s = s0
    states, policies, actions, rewards = [], [], [], []
    for _ in range(horizon):
        h = jnp.maximum(jnp.dot(s, w1, precision=hp) + b1, 0.0)
        logits = jnp.dot(h, w2, precision=hp) + b2
        action = jnp.argmax(logits, axis=-1).astype(jnp.int32)
        onehot = jax.nn.one_hot(action, w2.shape[1], dtype=jnp.float32)
        s_next = jnp.tanh(jnp.dot(s, amat, precision=hp)
                          + jnp.dot(onehot, bmat, precision=hp))
        reward = jnp.sum(s_next * rw, axis=-1)
        states.append(s)
        policies.append(logits)
        actions.append(action)
        rewards.append(reward)
        s = s_next
    return {
        "state": jnp.stack(states, axis=1),
        "policy": jnp.stack(policies, axis=1),
        "action": jnp.stack(actions, axis=1),
        "reward": jnp.stack(rewards, axis=1),
    }


if __name__ == "__main__":
    # Small shapes: batch_size=8 parallel episodes, state_dim=4 (CartPole-like),
    # hidden=32, num_actions=2, horizon T=16.
    B, D, H, A, T = 8, 4, 32, 2, 16

    key = jax.random.PRNGKey(0)
    k = jax.random.split(key, 8)
    s0 = jax.random.normal(k[0], (B, D), jnp.float32)
    w1 = jax.random.normal(k[1], (D, H), jnp.float32) * 0.5
    b1 = jax.random.normal(k[2], (1, H), jnp.float32) * 0.1
    w2 = jax.random.normal(k[3], (H, A), jnp.float32) * 0.5
    b2 = jax.random.normal(k[4], (1, A), jnp.float32) * 0.1
    amat = jax.random.normal(k[5], (D, D), jnp.float32) * 0.3
    bmat = jax.random.normal(k[6], (A, D), jnp.float32) * 0.3
    rw = jax.random.normal(k[7], (1, D), jnp.float32)

    cache = simulator_forward(s0, w1, b1, w2, b2, amat, bmat, rw, horizon=T)
    cache = jax.block_until_ready(cache)

    assert cache["state"].shape == (B, T, D)
    assert cache["policy"].shape == (B, T, A)
    assert cache["action"].shape == (B, T)
    assert cache["reward"].shape == (B, T)

    ref = _reference_rollout(s0, w1, b1, w2, b2, amat, bmat, rw, T)
    assert jnp.allclose(cache["state"], ref["state"], atol=1e-3, rtol=1e-3)
    assert jnp.allclose(cache["policy"], ref["policy"], atol=1e-3, rtol=1e-3)
    assert jnp.array_equal(cache["action"], ref["action"])
    assert jnp.allclose(cache["reward"], ref["reward"], atol=1e-3, rtol=1e-3)

    print("KERNEL_OK")
</pallas_src>

<mosaic_0001>
module attributes {stable_mosaic.version = 11 : i64} {
  func.func @_rollout_kernel(%arg0: i32, %arg1: memref<8x4xf32, #tpu.memory_space<vmem>>, %arg2: memref<4x133xf32, #tpu.memory_space<vmem>>, %arg3: memref<1x128xf32, #tpu.memory_space<vmem>>, %arg4: memref<128x2xf32, #tpu.memory_space<vmem>>, %arg5: memref<1x2xf32, #tpu.memory_space<vmem>>, %arg6: memref<2x4xf32, #tpu.memory_space<vmem>>, %arg7: memref<8x128xf32, #tpu.memory_space<vmem>>) attributes {dimension_semantics = [#tpu.dimension_semantics<arbitrary>], iteration_bounds = array<i64: 1>, scalar_prefetch = 0 : i64, scratch_operands = 0 : i64, tpu.core_type = #tpu.core_type<tc>, window_params = [{pipeline_mode = #tpu.pipeline_mode<synchronous>, transform_indices = @transform_0, window_bounds = array<i64: 8, 4>}, {pipeline_mode = #tpu.pipeline_mode<synchronous>, transform_indices = @transform_1, window_bounds = array<i64: 4, 133>}, {pipeline_mode = #tpu.pipeline_mode<synchronous>, transform_indices = @transform_2, window_bounds = array<i64: 1, 128>}, {pipeline_mode = #tpu.pipeline_mode<synchronous>, transform_indices = @transform_3, window_bounds = array<i64: 128, 2>}, {pipeline_mode = #tpu.pipeline_mode<synchronous>, transform_indices = @transform_4, window_bounds = array<i64: 1, 2>}, {pipeline_mode = #tpu.pipeline_mode<synchronous>, transform_indices = @transform_5, window_bounds = array<i64: 2, 4>}, {pipeline_mode = #tpu.pipeline_mode<synchronous>, transform_indices = @transform_6, window_bounds = array<i64: 8, 128>}]} {
    %c0 = arith.constant 0 : index
    %c0_0 = arith.constant 0 : index
    %0 = vector.load %arg2[%c0, %c0_0] : memref<4x133xf32, #tpu.memory_space<vmem>>, vector<4x133xf32>
    %c0_1 = arith.constant 0 : index
    %c0_2 = arith.constant 0 : index
    %1 = vector.load %arg3[%c0_1, %c0_2] : memref<1x128xf32, #tpu.memory_space<vmem>>, vector<1x128xf32>
    %c0_3 = arith.constant 0 : index
    %c0_4 = arith.constant 0 : index
    %2 = vector.load %arg4[%c0_3, %c0_4] : memref<128x2xf32, #tpu.memory_space<vmem>>, vector<128x2xf32>
    %c0_5 = arith.constant 0 : index
    %c0_6 = arith.constant 0 : index
    %3 = vector.load %arg5[%c0_5, %c0_6] : memref<1x2xf32, #tpu.memory_space<vmem>>, vector<1x2xf32>
    %c0_7 = arith.constant 0 : index
    %c0_8 = arith.constant 0 : index
    %4 = vector.load %arg6[%c0_7, %c0_8] : memref<2x4xf32, #tpu.memory_space<vmem>>, vector<1x4xf32>
    %5 = vector.shape_cast %4 : vector<1x4xf32> to vector<1x4xf32>
    %6 = vector.broadcast %5 : vector<1x4xf32> to vector<8x4xf32>
    %c1 = arith.constant 1 : index
    %c0_9 = arith.constant 0 : index
    %7 = vector.load %arg6[%c1, %c0_9] : memref<2x4xf32, #tpu.memory_space<vmem>>, vector<1x4xf32>
    %8 = vector.shape_cast %7 : vector<1x4xf32> to vector<1x4xf32>
    %9 = vector.broadcast %8 : vector<1x4xf32> to vector<8x4xf32>
    %c0_10 = arith.constant 0 : index
    %c0_11 = arith.constant 0 : index
    %10 = vector.load %arg1[%c0_10, %c0_11] : memref<8x4xf32, #tpu.memory_space<vmem>>, vector<8x4xf32>
    %cst = arith.constant dense<0.000000e+00> : vector<8x133xf32>
    %11 = tpu.matmul %10, %0, %cst {dimension_numbers = #tpu.dot_dimension_numbers<[1], [0], [0], [1], [0, 0, 1, 1], [], []>} : vector<8x4xf32>, vector<4x133xf32>, vector<8x133xf32> -> vector<8x133xf32>
    %12 = vector.extract_strided_slice %11 {offsets = [0, 0], sizes = [8, 128], strides = [1, 1]} : vector<8x133xf32> to vector<8x128xf32>
    %13 = vector.broadcast %1 : vector<1x128xf32> to vector<8x128xf32>
    %14 = arith.addf %12, %13 : vector<8x128xf32>
    %cst_12 = arith.constant 0.000000e+00 : f32
    %15 = vector.broadcast %cst_12 : f32 to vector<8x128xf32>
    %16 = arith.maximumf %14, %15 : vector<8x128xf32>
    %17 = vector.extract_strided_slice %11 {offsets = [0, 128], sizes = [8, 4], strides = [1, 1]} : vector<8x133xf32> to vector<8x4xf32>
    %cst_13 = arith.constant dense<0.000000e+00> : vector<8x2xf32>
    %18 = tpu.matmul %16, %2, %cst_13 {dimension_numbers = #tpu.dot_dimension_numbers<[1], [0], [0], [1], [0, 0, 1, 1], [], []>} : vector<8x128xf32>, vector<128x2xf32>, vector<8x2xf32> -> vector<8x2xf32>
    %19 = vector.broadcast %3 : vector<1x2xf32> to vector<8x2xf32>
    %20 = arith.addf %18, %19 : vector<8x2xf32>
    %c0_14 = arith.constant 0 : index
    %c0_15 = arith.constant 0 : index
    %21 = vector.load %arg7[%c0_14, %c0_15] : memref<8x128xf32, #tpu.memory_space<vmem>>, vector<8x4xf32>
    tpu.vector_store %arg7[%c0_14, %c0_15], %10 {strides = array<i32>} : memref<8x128xf32, #tpu.memory_space<vmem>>, vector<8x4xf32>,
    %c0_16 = arith.constant 0 : index
    %c64 = arith.constant 64 : index
    %22 = vector.load %arg7[%c0_16, %c64] : memref<8x128xf32, #tpu.memory_space<vmem>>, vector<8x2xf32>
    tpu.vector_store %arg7[%c0_16, %c64], %20 {strides = array<i32>} : memref<8x128xf32, #tpu.memory_space<vmem>>, vector<8x2xf32>,
    %23 = vector.extract_strided_slice %20 {offsets = [0, 1], sizes = [8, 1], strides = [1, 1]} : vector<8x2xf32> to vector<8x1xf32>
    %24 = vector.extract_strided_slice %20 {offsets = [0, 0], sizes = [8, 1], strides = [1, 1]} : vector<8x2xf32> to vector<8x1xf32>
    %25 = arith.cmpf ogt, %23, %24 : vector<8x1xf32>
    %26 = arith.extui %25 : vector<8x1xi1> to vector<8x1xi32>
    %27 = arith.sitofp %26 : vector<8x1xi32> to vector<8x1xf32>
    %c0_17 = arith.constant 0 : index
    %c112 = arith.constant 112 : index
    %28 = vector.load %arg7[%c0_17, %c112] : memref<8x128xf32, #tpu.memory_space<vmem>>, vector<8x1xf32>
    tpu.vector_store %arg7[%c0_17, %c112], %27 {strides = array<i32>} : memref<8x128xf32, #tpu.memory_space<vmem>>, vector<8x1xf32>,
    %29 = vector.shape_cast %25 : vector<8x1xi1> to vector<8x1xi1>
    %30 = vector.broadcast %29 : vector<8x1xi1> to vector<8x4xi1>
    %31 = arith.select %30, %9, %6 : vector<8x4xi1>, vector<8x4xf32>
    %32 = arith.addf %17, %31 : vector<8x4xf32>
    %33 = math.tanh %32 : vector<8x4xf32>
    %cst_18 = arith.constant dense<0.000000e+00> : vector<8x133xf32>
    %34 = tpu.matmul %33, %0, %cst_18 {dimension_numbers = #tpu.dot_dimension_numbers<[1], [0], [0], [1], [0, 0, 1, 1], [], []>} : vector<8x4xf32>, vector<4x133xf32>, vector<8x133xf32> -> vector<8x133xf32>
    %35 = vector.extract_strided_slice %34 {offsets = [0, 132], sizes = [8, 1], strides = [1, 1]} : vector<8x133xf32> to vector<8x1xf32>
    %c0_19 = arith.constant 0 : index
    %c96 = arith.constant 96 : index
    %36 = vector.load %arg7[%c0_19, %c96] : memref<8x128xf32, #tpu.memory_space<vmem>>, vector<8x1xf32>
    tpu.vector_store %arg7[%c0_19, %c96], %35 {strides = array<i32>} : memref<8x128xf32, #tpu.memory_space<vmem>>, vector<8x1xf32>,
    %37 = vector.extract_strided_slice %34 {offsets = [0, 0], sizes = [8, 128], strides = [1, 1]} : vector<8x133xf32> to vector<8x128xf32>
    %38 = vector.broadcast %1 : vector<1x128xf32> to vector<8x128xf32>
    %39 = arith.addf %37, %38 : vector<8x128xf32>
    %cst_20 = arith.constant 0.000000e+00 : f32
    %40 = vector.broadcast %cst_20 : f32 to vector<8x128xf32>
    %41 = arith.maximumf %39, %40 : vector<8x128xf32>
    %42 = vector.extract_strided_slice %34 {offsets = [0, 128], sizes = [8, 4], strides = [1, 1]} : vector<8x133xf32> to vector<8x4xf32>
    %cst_21 = arith.constant dense<0.000000e+00> : vector<8x2xf32>
    %43 = tpu.matmul %41, %2, %cst_21 {dimension_numbers = #tpu.dot_dimension_numbers<[1], [0], [0], [1], [0, 0, 1, 1], [], []>} : vector<8x128xf32>, vector<128x2xf32>, vector<8x2xf32> -> vector<8x2xf32>
    %44 = vector.broadcast %3 : vector<1x2xf32> to vector<8x2xf32>
    %45 = arith.addf %43, %44 : vector<8x2xf32>
    %c0_22 = arith.constant 0 : index
    %c4 = arith.constant 4 : index
    %46 = vector.load %arg7[%c0_22, %c4] : memref<8x128xf32, #tpu.memory_space<vmem>>, vector<8x4xf32>
    tpu.vector_store %arg7[%c0_22, %c4], %33 {strides = array<i32>} : memref<8x128xf32, #tpu.memory_space<vmem>>, vector<8x4xf32>,
    %c0_23 = arith.constant 0 : index
    %c66 = arith.constant 66 : index
    %47 = vector.load %arg7[%c0_23, %c66] : memref<8x128xf32, #tpu.memory_space<vmem>>, vector<8x2xf32>
    tpu.vector_store %arg7[%c0_23, %c66], %45 {strides = array<i32>} : memref<8x128xf32, #tpu.memory_space<vmem>>, vector<8x2xf32>,
    %48 = vector.extract_strided_slice %45 {offsets = [0, 1], sizes = [8, 1], strides = [1, 1]} : vector<8x2xf32> to vector<8x1xf32>
    %49 = vector.extract_strided_slice %45 {offsets = [0, 0], sizes = [8, 1], strides = [1, 1]} : vector<8x2xf32> to vector<8x1xf32>
    %50 = arith.cmpf ogt, %48, %49 : vector<8x1xf32>
    %51 = arith.extui %50 : vector<8x1xi1> to vector<8x1xi32>
    %52 = arith.sitofp %51 : vector<8x1xi32> to vector<8x1xf32>
    %c0_24 = arith.constant 0 : index
    %c113 = arith.constant 113 : index
    %53 = vector.load %arg7[%c0_24, %c113] : memref<8x128xf32, #tpu.memory_space<vmem>>, vector<8x1xf32>
    tpu.vector_store %arg7[%c0_24, %c113], %52 {strides = array<i32>} : memref<8x128xf32, #tpu.memory_space<vmem>>, vector<8x1xf32>,
    %54 = vector.shape_cast %50 : vector<8x1xi1> to vector<8x1xi1>
    %55 = vector.broadcast %54 : vector<8x1xi1> to vector<8x4xi1>
    %56 = arith.select %55, %9, %6 : vector<8x4xi1>, vector<8x4xf32>
    %57 = arith.addf %42, %56 : vector<8x4xf32>
    %58 = math.tanh %57 : vector<8x4xf32>
    %cst_25 = arith.constant dense<0.000000e+00> : vector<8x133xf32>
    %59 = tpu.matmul %58, %0, %cst_25 {dimension_numbers = #tpu.dot_dimension_numbers<[1], [0], [0], [1], [0, 0, 1, 1], [], []>} : vector<8x4xf32>, vector<4x133xf32>, vector<8x133xf32> -> vector<8x133xf32>
    %60 = vector.extract_strided_slice %59 {offsets = [0, 132], sizes = [8, 1], strides = [1, 1]} : vector<8x133xf32> to vector<8x1xf32>
    %c0_26 = arith.constant 0 : index
    %c97 = arith.constant 97 : index
    %61 = vector.load %arg7[%c0_26, %c97] : memref<8x128xf32, #tpu.memory_space<vmem>>, vector<8x1xf32>
    tpu.vector_store %arg7[%c0_26, %c97], %60 {strides = array<i32>} : memref<8x128xf32, #tpu.memory_space<vmem>>, vector<8x1xf32>,
    %62 = vector.extract_strided_slice %59 {offsets = [0, 0], sizes = [8, 128], strides = [1, 1]} : vector<8x133xf32> to vector<8x128xf32>
    %63 = vector.broadcast %1 : vector<1x128xf32> to vector<8x128xf32>
    %64 = arith.addf %62, %63 : vector<8x128xf32>
    %cst_27 = arith.constant 0.000000e+00 : f32
    %65 = vector.broadcast %cst_27 : f32 to vector<8x128xf32>
    %66 = arith.maximumf %64, %65 : vector<8x128xf32>
    %67 = vector.extract_strided_slice %59 {offsets = [0, 128], sizes = [8, 4], strides = [1, 1]} : vector<8x133xf32> to vector<8x4xf32>
    %cst_28 = arith.constant dense<0.000000e+00> : vector<8x2xf32>
    %68 = tpu.matmul %66, %2, %cst_28 {dimension_numbers = #tpu.dot_dimension_numbers<[1], [0], [0], [1], [0, 0, 1, 1], [], []>} : vector<8x128xf32>, vector<128x2xf32>, vector<8x2xf32> -> vector<8x2xf32>
    %69 = vector.broadcast %3 : vector<1x2xf32> to vector<8x2xf32>
    %70 = arith.addf %68, %69 : vector<8x2xf32>
    %c0_29 = arith.constant 0 : index
    %c8 = arith.constant 8 : index
    %71 = vector.load %arg7[%c0_29, %c8] : memref<8x128xf32, #tpu.memory_space<vmem>>, vector<8x4xf32>
    tpu.vector_store %arg7[%c0_29, %c8], %58 {strides = array<i32>} : memref<8x128xf32, #tpu.memory_space<vmem>>, vector<8x4xf32>,
    %c0_30 = arith.constant 0 : index
    %c68 = arith.constant 68 : index
    %72 = vector.load %arg7[%c0_30, %c68] : memref<8x128xf32, #tpu.memory_space<vmem>>, vector<8x2xf32>
    tpu.vector_store %arg7[%c0_30, %c68], %70 {strides = array<i32>} : memref<8x128xf32, #tpu.memory_space<vmem>>, vector<8x2xf32>,
    %73 = vector.extract_strided_slice %70 {offsets = [0, 1], sizes = [8, 1], strides = [1, 1]} : vector<8x2xf32> to vector<8x1xf32>
    %74 = vector.extract_strided_slice %70 {offsets = [0, 0], sizes = [8, 1], strides = [1, 1]} : vector<8x2xf32> to vector<8x1xf32>
    %75 = arith.cmpf ogt, %73, %74 : vector<8x1xf32>
    %76 = arith.extui %75 : vector<8x1xi1> to vector<8x1xi32>
    %77 = arith.sitofp %76 : vector<8x1xi32> to vector<8x1xf32>
    %c0_31 = arith.constant 0 : index
    %c114 = arith.constant 114 : index
    %78 = vector.load %arg7[%c0_31, %c114] : memref<8x128xf32, #tpu.memory_space<vmem>>, vector<8x1xf32>
    tpu.vector_store %arg7[%c0_31, %c114], %77 {strides = array<i32>} : memref<8x128xf32, #tpu.memory_space<vmem>>, vector<8x1xf32>,
    %79 = vector.shape_cast %75 : vector<8x1xi1> to vector<8x1xi1>
    %80 = vector.broadcast %79 : vector<8x1xi1> to vector<8x4xi1>
    %81 = arith.select %80, %9, %6 : vector<8x4xi1>, vector<8x4xf32>
    %82 = arith.addf %67, %81 : vector<8x4xf32>
    %83 = math.tanh %82 : vector<8x4xf32>
    %cst_32 = arith.constant dense<0.000000e+00> : vector<8x133xf32>
    %84 = tpu.matmul %83, %0, %cst_32 {dimension_numbers = #tpu.dot_dimension_numbers<[1], [0], [0], [1], [0, 0, 1, 1], [], []>} : vector<8x4xf32>, vector<4x133xf32>, vector<8x133xf32> -> vector<8x133xf32>
    %85 = vector.extract_strided_slice %84 {offsets = [0, 132], sizes = [8, 1], strides = [1, 1]} : vector<8x133xf32> to vector<8x1xf32>
    %c0_33 = arith.constant 0 : index
    %c98 = arith.constant 98 : index
    %86 = vector.load %arg7[%c0_33, %c98] : memref<8x128xf32, #tpu.memory_space<vmem>>, vector<8x1xf32>
    tpu.vector_store %arg7[%c0_33, %c98], %85 {strides = array<i32>} : memref<8x128xf32, #tpu.memory_space<vmem>>, vector<8x1xf32>,
    %87 = vector.extract_strided_slice %84 {offsets = [0, 0], sizes = [8, 128], strides = [1, 1]} : vector<8x133xf32> to vector<8x128xf32>
    %88 = vector.broadcast %1 : vector<1x128xf32> to vector<8x128xf32>
    %89 = arith.addf %87, %88 : vector<8x128xf32>
    %cst_34 = arith.constant 0.000000e+00 : f32
    %90 = vector.broadcast %cst_34 : f32 to vector<8x128xf32>
    %91 = arith.maximumf %89, %90 : vector<8x128xf32>
    %92 = vector.extract_strided_slice %84 {offsets = [0, 128], sizes = [8, 4], strides = [1, 1]} : vector<8x133xf32> to vector<8x4xf32>
    %cst_35 = arith.constant dense<0.000000e+00> : vector<8x2xf32>
    %93 = tpu.matmul %91, %2, %cst_35 {dimension_numbers = #tpu.dot_dimension_numbers<[1], [0], [0], [1], [0, 0, 1, 1], [], []>} : vector<8x128xf32>, vector<128x2xf32>, vector<8x2xf32> -> vector<8x2xf32>
    %94 = vector.broadcast %3 : vector<1x2xf32> to vector<8x2xf32>
    %95 = arith.addf %93, %94 : vector<8x2xf32>
    %c0_36 = arith.constant 0 : index
    %c12 = arith.constant 12 : index
    %96 = vector.load %arg7[%c0_36, %c12] : memref<8x128xf32, #tpu.memory_space<vmem>>, vector<8x4xf32>
    tpu.vector_store %arg7[%c0_36, %c12], %83 {strides = array<i32>} : memref<8x128xf32, #tpu.memory_space<vmem>>, vector<8x4xf32>,
    %c0_37 = arith.constant 0 : index
    %c70 = arith.constant 70 : index
    %97 = vector.load %arg7[%c0_37, %c70] : memref<8x128xf32, #tpu.memory_space<vmem>>, vector<8x2xf32>
    tpu.vector_store %arg7[%c0_37, %c70], %95 {strides = array<i32>} : memref<8x128xf32, #tpu.memory_space<vmem>>, vector<8x2xf32>,
    %98 = vector.extract_strided_slice %95 {offsets = [0, 1], sizes = [8, 1], strides = [1, 1]} : vector<8x2xf32> to vector<8x1xf32>
    %99 = vector.extract_strided_slice %95 {offsets = [0, 0], sizes = [8, 1], strides = [1, 1]} : vector<8x2xf32> to vector<8x1xf32>
    %100 = arith.cmpf ogt, %98, %99 : vector<8x1xf32>
    %101 = arith.extui %100 : vector<8x1xi1> to vector<8x1xi32>
    %102 = arith.sitofp %101 : vector<8x1xi32> to vector<8x1xf32>
    %c0_38 = arith.constant 0 : index
    %c115 = arith.constant 115 : index
    %103 = vector.load %arg7[%c0_38, %c115] : memref<8x128xf32, #tpu.memory_space<vmem>>, vector<8x1xf32>
    tpu.vector_store %arg7[%c0_38, %c115], %102 {strides = array<i32>} : memref<8x128xf32, #tpu.memory_space<vmem>>, vector<8x1xf32>,
    %104 = vector.shape_cast %100 : vector<8x1xi1> to vector<8x1xi1>
    %105 = vector.broadcast %104 : vector<8x1xi1> to vector<8x4xi1>
    %106 = arith.select %105, %9, %6 : vector<8x4xi1>, vector<8x4xf32>
    %107 = arith.addf %92, %106 : vector<8x4xf32>
    %108 = math.tanh %107 : vector<8x4xf32>
    %cst_39 = arith.constant dense<0.000000e+00> : vector<8x133xf32>
    %109 = tpu.matmul %108, %0, %cst_39 {dimension_numbers = #tpu.dot_dimension_numbers<[1], [0], [0], [1], [0, 0, 1, 1], [], []>} : vector<8x4xf32>, vector<4x133xf32>, vector<8x133xf32> -> vector<8x133xf32>
    %110 = vector.extract_strided_slice %109 {offsets = [0, 132], sizes = [8, 1], strides = [1, 1]} : vector<8x133xf32> to vector<8x1xf32>
    %c0_40 = arith.constant 0 : index
    %c99 = arith.constant 99 : index
    %111 = vector.load %arg7[%c0_40, %c99] : memref<8x128xf32, #tpu.memory_space<vmem>>, vector<8x1xf32>
    tpu.vector_store %arg7[%c0_40, %c99], %110 {strides = array<i32>} : memref<8x128xf32, #tpu.memory_space<vmem>>, vector<8x1xf32>,
    %112 = vector.extract_strided_slice %109 {offsets = [0, 0], sizes = [8, 128], strides = [1, 1]} : vector<8x133xf32> to vector<8x128xf32>
    %113 = vector.broadcast %1 : vector<1x128xf32> to vector<8x128xf32>
    %114 = arith.addf %112, %113 : vector<8x128xf32>
    %cst_41 = arith.constant 0.000000e+00 : f32
    %115 = vector.broadcast %cst_41 : f32 to vector<8x128xf32>
    %116 = arith.maximumf %114, %115 : vector<8x128xf32>
    %117 = vector.extract_strided_slice %109 {offsets = [0, 128], sizes = [8, 4], strides = [1, 1]} : vector<8x133xf32> to vector<8x4xf32>
    %cst_42 = arith.constant dense<0.000000e+00> : vector<8x2xf32>
    %118 = tpu.matmul %116, %2, %cst_42 {dimension_numbers = #tpu.dot_dimension_numbers<[1], [0], [0], [1], [0, 0, 1, 1], [], []>} : vector<8x128xf32>, vector<128x2xf32>, vector<8x2xf32> -> vector<8x2xf32>
    %119 = vector.broadcast %3 : vector<1x2xf32> to vector<8x2xf32>
    %120 = arith.addf %118, %119 : vector<8x2xf32>
    %c0_43 = arith.constant 0 : index
    %c16 = arith.constant 16 : index
    %121 = vector.load %arg7[%c0_43, %c16] : memref<8x128xf32, #tpu.memory_space<vmem>>, vector<8x4xf32>
    tpu.vector_store %arg7[%c0_43, %c16], %108 {strides = array<i32>} : memref<8x128xf32, #tpu.memory_space<vmem>>, vector<8x4xf32>,
    %c0_44 = arith.constant 0 : index
    %c72 = arith.constant 72 : index
    %122 = vector.load %arg7[%c0_44, %c72] : memref<8x128xf32, #tpu.memory_space<vmem>>, vector<8x2xf32>
    tpu.vector_store %arg7[%c0_44, %c72], %120 {strides = array<i32>} : memref<8x128xf32, #tpu.memory_space<vmem>>, vector<8x2xf32>,
    %123 = vector.extract_strided_slice %120 {offsets = [0, 1], sizes = [8, 1], strides = [1, 1]} : vector<8x2xf32> to vector<8x1xf32>
    %124 = vector.extract_strided_slice %120 {offsets = [0, 0], sizes = [8, 1], strides = [1, 1]} : vector<8x2xf32> to vector<8x1xf32>
    %125 = arith.cmpf ogt, %123, %124 : vector<8x1xf32>
    %126 = arith.extui %125 : vector<8x1xi1> to vector<8x1xi32>
    %127 = arith.sitofp %126 : vector<8x1xi32> to vector<8x1xf32>
    %c0_45 = arith.constant 0 : index
    %c116 = arith.constant 116 : index
    %128 = vector.load %arg7[%c0_45, %c116] : memref<8x128xf32, #tpu.memory_space<vmem>>, vector<8x1xf32>
    tpu.vector_store %arg7[%c0_45, %c116], %127 {strides = array<i32>} : memref<8x128xf32, #tpu.memory_space<vmem>>, vector<8x1xf32>,
    %129 = vector.shape_cast %125 : vector<8x1xi1> to vector<8x1xi1>
    %130 = vector.broadcast %129 : vector<8x1xi1> to vector<8x4xi1>
    %131 = arith.select %130, %9, %6 : vector<8x4xi1>, vector<8x4xf32>
    %132 = arith.addf %117, %131 : vector<8x4xf32>
    %133 = math.tanh %132 : vector<8x4xf32>
    %cst_46 = arith.constant dense<0.000000e+00> : vector<8x133xf32>
    %134 = tpu.matmul %133, %0, %cst_46 {dimension_numbers = #tpu.dot_dimension_numbers<[1], [0], [0], [1], [0, 0, 1, 1], [], []>} : vector<8x4xf32>, vector<4x133xf32>, vector<8x133xf32> -> vector<8x133xf32>
    %135 = vector.extract_strided_slice %134 {offsets = [0, 132], sizes = [8, 1], strides = [1, 1]} : vector<8x133xf32> to vector<8x1xf32>
    %c0_47 = arith.constant 0 : index
    %c100 = arith.constant 100 : index
    %136 = vector.load %arg7[%c0_47, %c100] : memref<8x128xf32, #tpu.memory_space<vmem>>, vector<8x1xf32>
    tpu.vector_store %arg7[%c0_47, %c100], %135 {strides = array<i32>} : memref<8x128xf32, #tpu.memory_space<vmem>>, vector<8x1xf32>,
    %137 = vector.extract_strided_slice %134 {offsets = [0, 0], sizes = [8, 128], strides = [1, 1]} : vector<8x133xf32> to vector<8x128xf32>
    %138 = vector.broadcast %1 : vector<1x128xf32> to vector<8x128xf32>
    %139 = arith.addf %137, %138 : vector<8x128xf32>
    %cst_48 = arith.constant 0.000000e+00 : f32
    %140 = vector.broadcast %cst_48 : f32 to vector<8x128xf32>
    %141 = arith.maximumf %139, %140 : vector<8x128xf32>
    %142 = vector.extract_strided_slice %134 {offsets = [0, 128], sizes = [8, 4], strides = [1, 1]} : vector<8x133xf32> to vector<8x4xf32>
    %cst_49 = arith.constant dense<0.000000e+00> : vector<8x2xf32>
    %143 = tpu.matmul %141, %2, %cst_49 {dimension_numbers = #tpu.dot_dimension_numbers<[1], [0], [0], [1], [0, 0, 1, 1], [], []>} : vector<8x128xf32>, vector<128x2xf32>, vector<8x2xf32> -> vector<8x2xf32>
    %144 = vector.broadcast %3 : vector<1x2xf32> to vector<8x2xf32>
    %145 = arith.addf %143, %144 : vector<8x2xf32>
    %c0_50 = arith.constant 0 : index
    %c20 = arith.constant 20 : index
    %146 = vector.load %arg7[%c0_50, %c20] : memref<8x128xf32, #tpu.memory_space<vmem>>, vector<8x4xf32>
    tpu.vector_store %arg7[%c0_50, %c20], %133 {strides = array<i32>} : memref<8x128xf32, #tpu.memory_space<vmem>>, vector<8x4xf32>,
    %c0_51 = arith.constant 0 : index
    %c74 = arith.constant 74 : index
    %147 = vector.load %arg7[%c0_51, %c74] : memref<8x128xf32, #tpu.memory_space<vmem>>, vector<8x2xf32>
    tpu.vector_store %arg7[%c0_51, %c74], %145 {strides = array<i32>} : memref<8x128xf32, #tpu.memory_space<vmem>>, vector<8x2xf32>,
    %148 = vector.extract_strided_slice %145 {offsets = [0, 1], sizes = [8, 1], strides = [1, 1]} : vector<8x2xf32> to vector<8x1xf32>
    %149 = vector.extract_strided_slice %145 {offsets = [0, 0], sizes = [8, 1], strides = [1, 1]} : vector<8x2xf32> to vector<8x1xf32>
    %150 = arith.cmpf ogt, %148, %149 : vector<8x1xf32>
    %151 = arith.extui %150 : vector<8x1xi1> to vector<8x1xi32>
    %152 = arith.sitofp %151 : vector<8x1xi32> to vector<8x1xf32>
    %c0_52 = arith.constant 0 : index
    %c117 = arith.constant 117 : index
    %153 = vector.load %arg7[%c0_52, %c117] : memref<8x128xf32, #tpu.memory_space<vmem>>, vector<8x1xf32>
    tpu.vector_store %arg7[%c0_52, %c117], %152 {strides = array<i32>} : memref<8x128xf32, #tpu.memory_space<vmem>>, vector<8x1xf32>,
    %154 = vector.shape_cast %150 : vector<8x1xi1> to vector<8x1xi1>
    %155 = vector.broadcast %154 : vector<8x1xi1> to vector<8x4xi1>
    %156 = arith.select %155, %9, %6 : vector<8x4xi1>, vector<8x4xf32>
    %157 = arith.addf %142, %156 : vector<8x4xf32>
    %158 = math.tanh %157 : vector<8x4xf32>
    %cst_53 = arith.constant dense<0.000000e+00> : vector<8x133xf32>
    %159 = tpu.matmul %158, %0, %cst_53 {dimension_numbers = #tpu.dot_dimension_numbers<[1], [0], [0], [1], [0, 0, 1, 1], [], []>} : vector<8x4xf32>, vector<4x133xf32>, vector<8x133xf32> -> vector<8x133xf32>
    %160 = vector.extract_strided_slice %159 {offsets = [0, 132], sizes = [8, 1], strides = [1, 1]} : vector<8x133xf32> to vector<8x1xf32>
    %c0_54 = arith.constant 0 : index
    %c101 = arith.constant 101 : index
    %161 = vector.load %arg7[%c0_54, %c101] : memref<8x128xf32, #tpu.memory_space<vmem>>, vector<8x1xf32>
    tpu.vector_store %arg7[%c0_54, %c101], %160 {strides = array<i32>} : memref<8x128xf32, #tpu.memory_space<vmem>>, vector<8x1xf32>,
    %162 = vector.extract_strided_slice %159 {offsets = [0, 0], sizes = [8, 128], strides = [1, 1]} : vector<8x133xf32> to vector<8x128xf32>
    %163 = vector.broadcast %1 : vector<1x128xf32> to vector<8x128xf32>
    %164 = arith.addf %162, %163 : vector<8x128xf32>
    %cst_55 = arith.constant 0.000000e+00 : f32
    %165 = vector.broadcast %cst_55 : f32 to vector<8x128xf32>
    %166 = arith.maximumf %164, %165 : vector<8x128xf32>
    %167 = vector.extract_strided_slice %159 {offsets = [0, 128], sizes = [8, 4], strides = [1, 1]} : vector<8x133xf32> to vector<8x4xf32>
    %cst_56 = arith.constant dense<0.000000e+00> : vector<8x2xf32>
    %168 = tpu.matmul %166, %2, %cst_56 {dimension_numbers = #tpu.dot_dimension_numbers<[1], [0], [0], [1], [0, 0, 1, 1], [], []>} : vector<8x128xf32>, vector<128x2xf32>, vector<8x2xf32> -> vector<8x2xf32>
    %169 = vector.broadcast %3 : vector<1x2xf32> to vector<8x2xf32>
    %170 = arith.addf %168, %169 : vector<8x2xf32>
    %c0_57 = arith.constant 0 : index
    %c24 = arith.constant 24 : index
    %171 = vector.load %arg7[%c0_57, %c24] : memref<8x128xf32, #tpu.memory_space<vmem>>, vector<8x4xf32>
    tpu.vector_store %arg7[%c0_57, %c24], %158 {strides = array<i32>} : memref<8x128xf32, #tpu.memory_space<vmem>>, vector<8x4xf32>,
    %c0_58 = arith.constant 0 : index
    %c76 = arith.constant 76 : index
    %172 = vector.load %arg7[%c0_58, %c76] : memref<8x128xf32, #tpu.memory_space<vmem>>, vector<8x2xf32>
    tpu.vector_store %arg7[%c0_58, %c76], %170 {strides = array<i32>} : memref<8x128xf32, #tpu.memory_space<vmem>>, vector<8x2xf32>,
    %173 = vector.extract_strided_slice %170 {offsets = [0, 1], sizes = [8, 1], strides = [1, 1]} : vector<8x2xf32> to vector<8x1xf32>
    %174 = vector.extract_strided_slice %170 {offsets = [0, 0], sizes = [8, 1], strides = [1, 1]} : vector<8x2xf32> to vector<8x1xf32>
    %175 = arith.cmpf ogt, %173, %174 : vector<8x1xf32>
    %176 = arith.extui %175 : vector<8x1xi1> to vector<8x1xi32>
    %177 = arith.sitofp %176 : vector<8x1xi32> to vector<8x1xf32>
    %c0_59 = arith.constant 0 : index
    %c118 = arith.constant 118 : index
    %178 = vector.load %arg7[%c0_59, %c118] : memref<8x128xf32, #tpu.memory_space<vmem>>, vector<8x1xf32>
    tpu.vector_store %arg7[%c0_59, %c118], %177 {strides = array<i32>} : memref<8x128xf32, #tpu.memory_space<vmem>>, vector<8x1xf32>,
    %179 = vector.shape_cast %175 : vector<8x1xi1> to vector<8x1xi1>
    %180 = vector.broadcast %179 : vector<8x1xi1> to vector<8x4xi1>
    %181 = arith.select %180, %9, %6 : vector<8x4xi1>, vector<8x4xf32>
    %182 = arith.addf %167, %181 : vector<8x4xf32>
    %183 = math.tanh %182 : vector<8x4xf32>
    %cst_60 = arith.constant dense<0.000000e+00> : vector<8x133xf32>
    %184 = tpu.matmul %183, %0, %cst_60 {dimension_numbers = #tpu.dot_dimension_numbers<[1], [0], [0], [1], [0, 0, 1, 1], [], []>} : vector<8x4xf32>, vector<4x133xf32>, vector<8x133xf32> -> vector<8x133xf32>
    %185 = vector.extract_strided_slice %184 {offsets = [0, 132], sizes = [8, 1], strides = [1, 1]} : vector<8x133xf32> to vector<8x1xf32>
    %c0_61 = arith.constant 0 : index
    %c102 = arith.constant 102 : index
    %186 = vector.load %arg7[%c0_61, %c102] : memref<8x128xf32, #tpu.memory_space<vmem>>, vector<8x1xf32>
    tpu.vector_store %arg7[%c0_61, %c102], %185 {strides = array<i32>} : memref<8x128xf32, #tpu.memory_space<vmem>>, vector<8x1xf32>,
    %187 = vector.extract_strided_slice %184 {offsets = [0, 0], sizes = [8, 128], strides = [1, 1]} : vector<8x133xf32> to vector<8x128xf32>
    %188 = vector.broadcast %1 : vector<1x128xf32> to vector<8x128xf32>
    %189 = arith.addf %187, %188 : vector<8x128xf32>
    %cst_62 = arith.constant 0.000000e+00 : f32
    %190 = vector.broadcast %cst_62 : f32 to vector<8x128xf32>
    %191 = arith.maximumf %189, %190 : vector<8x128xf32>
    %192 = vector.extract_strided_slice %184 {offsets = [0, 128], sizes = [8, 4], strides = [1, 1]} : vector<8x133xf32> to vector<8x4xf32>
    %cst_63 = arith.constant dense<0.000000e+00> : vector<8x2xf32>
    %193 = tpu.matmul %191, %2, %cst_63 {dimension_numbers = #tpu.dot_dimension_numbers<[1], [0], [0], [1], [0, 0, 1, 1], [], []>} : vector<8x128xf32>, vector<128x2xf32>, vector<8x2xf32> -> vector<8x2xf32>
    %194 = vector.broadcast %3 : vector<1x2xf32> to vector<8x2xf32>
    %195 = arith.addf %193, %194 : vector<8x2xf32>
    %c0_64 = arith.constant 0 : index
    %c28 = arith.constant 28 : index
    %196 = vector.load %arg7[%c0_64, %c28] : memref<8x128xf32, #tpu.memory_space<vmem>>, vector<8x4xf32>
    tpu.vector_store %arg7[%c0_64, %c28], %183 {strides = array<i32>} : memref<8x128xf32, #tpu.memory_space<vmem>>, vector<8x4xf32>,
    %c0_65 = arith.constant 0 : index
    %c78 = arith.constant 78 : index
    %197 = vector.load %arg7[%c0_65, %c78] : memref<8x128xf32, #tpu.memory_space<vmem>>, vector<8x2xf32>
    tpu.vector_store %arg7[%c0_65, %c78], %195 {strides = array<i32>} : memref<8x128xf32, #tpu.memory_space<vmem>>, vector<8x2xf32>,
    %198 = vector.extract_strided_slice %195 {offsets = [0, 1], sizes = [8, 1], strides = [1, 1]} : vector<8x2xf32> to vector<8x1xf32>
    %199 = vector.extract_strided_slice %195 {offsets = [0, 0], sizes = [8, 1], strides = [1, 1]} : vector<8x2xf32> to vector<8x1xf32>
    %200 = arith.cmpf ogt, %198, %199 : vector<8x1xf32>
    %201 = arith.extui %200 : vector<8x1xi1> to vector<8x1xi32>
    %202 = arith.sitofp %201 : vector<8x1xi32> to vector<8x1xf32>
    %c0_66 = arith.constant 0 : index
    %c119 = arith.constant 119 : index
    %203 = vector.load %arg7[%c0_66, %c119] : memref<8x128xf32, #tpu.memory_space<vmem>>, vector<8x1xf32>
    tpu.vector_store %arg7[%c0_66, %c119], %202 {strides = array<i32>} : memref<8x128xf32, #tpu.memory_space<vmem>>, vector<8x1xf32>,
    %204 = vector.shape_cast %200 : vector<8x1xi1> to vector<8x1xi1>
    %205 = vector.broadcast %204 : vector<8x1xi1> to vector<8x4xi1>
    %206 = arith.select %205, %9, %6 : vector<8x4xi1>, vector<8x4xf32>
    %207 = arith.addf %192, %206 : vector<8x4xf32>
    %208 = math.tanh %207 : vector<8x4xf32>
    %cst_67 = arith.constant dense<0.000000e+00> : vector<8x133xf32>
    %209 = tpu.matmul %208, %0, %cst_67 {dimension_numbers = #tpu.dot_dimension_numbers<[1], [0], [0], [1], [0, 0, 1, 1], [], []>} : vector<8x4xf32>, vector<4x133xf32>, vector<8x133xf32> -> vector<8x133xf32>
    %210 = vector.extract_strided_slice %209 {offsets = [0, 132], sizes = [8, 1], strides = [1, 1]} : vector<8x133xf32> to vector<8x1xf32>
    %c0_68 = arith.constant 0 : index
    %c103 = arith.constant 103 : index
    %211 = vector.load %arg7[%c0_68, %c103] : memref<8x128xf32, #tpu.memory_space<vmem>>, vector<8x1xf32>
    tpu.vector_store %arg7[%c0_68, %c103], %210 {strides = array<i32>} : memref<8x128xf32, #tpu.memory_space<vmem>>, vector<8x1xf32>,
    %212 = vector.extract_strided_slice %209 {offsets = [0, 0], sizes = [8, 128], strides = [1, 1]} : vector<8x133xf32> to vector<8x128xf32>
    %213 = vector.broadcast %1 : vector<1x128xf32> to vector<8x128xf32>
    %214 = arith.addf %212, %213 : vector<8x128xf32>
    %cst_69 = arith.constant 0.000000e+00 : f32
    %215 = vector.broadcast %cst_69 : f32 to vector<8x128xf32>
    %216 = arith.maximumf %214, %215 : vector<8x128xf32>
    %217 = vector.extract_strided_slice %209 {offsets = [0, 128], sizes = [8, 4], strides = [1, 1]} : vector<8x133xf32> to vector<8x4xf32>
    %cst_70 = arith.constant dense<0.000000e+00> : vector<8x2xf32>
    %218 = tpu.matmul %216, %2, %cst_70 {dimension_numbers = #tpu.dot_dimension_numbers<[1], [0], [0], [1], [0, 0, 1, 1], [], []>} : vector<8x128xf32>, vector<128x2xf32>, vector<8x2xf32> -> vector<8x2xf32>
    %219 = vector.broadcast %3 : vector<1x2xf32> to vector<8x2xf32>
    %220 = arith.addf %218, %219 : vector<8x2xf32>
    %c0_71 = arith.constant 0 : index
    %c32 = arith.constant 32 : index
    %221 = vector.load %arg7[%c0_71, %c32] : memref<8x128xf32, #tpu.memory_space<vmem>>, vector<8x4xf32>
    tpu.vector_store %arg7[%c0_71, %c32], %208 {strides = array<i32>} : memref<8x128xf32, #tpu.memory_space<vmem>>, vector<8x4xf32>,
    %c0_72 = arith.constant 0 : index
    %c80 = arith.constant 80 : index
    %222 = vector.load %arg7[%c0_72, %c80] : memref<8x128xf32, #tpu.memory_space<vmem>>, vector<8x2xf32>
    tpu.vector_store %arg7[%c0_72, %c80], %220 {strides = array<i32>} : memref<8x128xf32, #tpu.memory_space<vmem>>, vector<8x2xf32>,
    %223 = vector.extract_strided_slice %220 {offsets = [0, 1], sizes = [8, 1], strides = [1, 1]} : vector<8x2xf32> to vector<8x1xf32>
    %224 = vector.extract_strided_slice %220 {offsets = [0, 0], sizes = [8, 1], strides = [1, 1]} : vector<8x2xf32> to vector<8x1xf32>
    %225 = arith.cmpf ogt, %223, %224 : vector<8x1xf32>
    %226 = arith.extui %225 : vector<8x1xi1> to vector<8x1xi32>
    %227 = arith.sitofp %226 : vector<8x1xi32> to vector<8x1xf32>
    %c0_73 = arith.constant 0 : index
    %c120 = arith.constant 120 : index
    %228 = vector.load %arg7[%c0_73, %c120] : memref<8x128xf32, #tpu.memory_space<vmem>>, vector<8x1xf32>
    tpu.vector_store %arg7[%c0_73, %c120], %227 {strides = array<i32>} : memref<8x128xf32, #tpu.memory_space<vmem>>, vector<8x1xf32>,
    %229 = vector.shape_cast %225 : vector<8x1xi1> to vector<8x1xi1>
    %230 = vector.broadcast %229 : vector<8x1xi1> to vector<8x4xi1>
    %231 = arith.select %230, %9, %6 : vector<8x4xi1>, vector<8x4xf32>
    %232 = arith.addf %217, %231 : vector<8x4xf32>
    %233 = math.tanh %232 : vector<8x4xf32>
    %cst_74 = arith.constant dense<0.000000e+00> : vector<8x133xf32>
    %234 = tpu.matmul %233, %0, %cst_74 {dimension_numbers = #tpu.dot_dimension_numbers<[1], [0], [0], [1], [0, 0, 1, 1], [], []>} : vector<8x4xf32>, vector<4x133xf32>, vector<8x133xf32> -> vector<8x133xf32>
    %235 = vector.extract_strided_slice %234 {offsets = [0, 132], sizes = [8, 1], strides = [1, 1]} : vector<8x133xf32> to vector<8x1xf32>
    %c0_75 = arith.constant 0 : index
    %c104 = arith.constant 104 : index
    %236 = vector.load %arg7[%c0_75, %c104] : memref<8x128xf32, #tpu.memory_space<vmem>>, vector<8x1xf32>
    tpu.vector_store %arg7[%c0_75, %c104], %235 {strides = array<i32>} : memref<8x128xf32, #tpu.memory_space<vmem>>, vector<8x1xf32>,
    %237 = vector.extract_strided_slice %234 {offsets = [0, 0], sizes = [8, 128], strides = [1, 1]} : vector<8x133xf32> to vector<8x128xf32>
    %238 = vector.broadcast %1 : vector<1x128xf32> to vector<8x128xf32>
    %239 = arith.addf %237, %238 : vector<8x128xf32>
    %cst_76 = arith.constant 0.000000e+00 : f32
    %240 = vector.broadcast %cst_76 : f32 to vector<8x128xf32>
    %241 = arith.maximumf %239, %240 : vector<8x128xf32>
    %242 = vector.extract_strided_slice %234 {offsets = [0, 128], sizes = [8, 4], strides = [1, 1]} : vector<8x133xf32> to vector<8x4xf32>
    %cst_77 = arith.constant dense<0.000000e+00> : vector<8x2xf32>
    %243 = tpu.matmul %241, %2, %cst_77 {dimension_numbers = #tpu.dot_dimension_numbers<[1], [0], [0], [1], [0, 0, 1, 1], [], []>} : vector<8x128xf32>, vector<128x2xf32>, vector<8x2xf32> -> vector<8x2xf32>
    %244 = vector.broadcast %3 : vector<1x2xf32> to vector<8x2xf32>
    %245 = arith.addf %243, %244 : vector<8x2xf32>
    %c0_78 = arith.constant 0 : index
    %c36 = arith.constant 36 : index
    %246 = vector.load %arg7[%c0_78, %c36] : memref<8x128xf32, #tpu.memory_space<vmem>>, vector<8x4xf32>
    tpu.vector_store %arg7[%c0_78, %c36], %233 {strides = array<i32>} : memref<8x128xf32, #tpu.memory_space<vmem>>, vector<8x4xf32>,
    %c0_79 = arith.constant 0 : index
    %c82 = arith.constant 82 : index
    %247 = vector.load %arg7[%c0_79, %c82] : memref<8x128xf32, #tpu.memory_space<vmem>>, vector<8x2xf32>
    tpu.vector_store %arg7[%c0_79, %c82], %245 {strides = array<i32>} : memref<8x128xf32, #tpu.memory_space<vmem>>, vector<8x2xf32>,
    %248 = vector.extract_strided_slice %245 {offsets = [0, 1], sizes = [8, 1], strides = [1, 1]} : vector<8x2xf32> to vector<8x1xf32>
    %249 = vector.extract_strided_slice %245 {offsets = [0, 0], sizes = [8, 1], strides = [1, 1]} : vector<8x2xf32> to vector<8x1xf32>
    %250 = arith.cmpf ogt, %248, %249 : vector<8x1xf32>
    %251 = arith.extui %250 : vector<8x1xi1> to vector<8x1xi32>
    %252 = arith.sitofp %251 : vector<8x1xi32> to vector<8x1xf32>
    %c0_80 = arith.constant 0 : index
    %c121 = arith.constant 121 : index
    %253 = vector.load %arg7[%c0_80, %c121] : memref<8x128xf32, #tpu.memory_space<vmem>>, vector<8x1xf32>
    tpu.vector_store %arg7[%c0_80, %c121], %252 {strides = array<i32>} : memref<8x128xf32, #tpu.memory_space<vmem>>, vector<8x1xf32>,
    %254 = vector.shape_cast %250 : vector<8x1xi1> to vector<8x1xi1>
    %255 = vector.broadcast %254 : vector<8x1xi1> to vector<8x4xi1>
    %256 = arith.select %255, %9, %6 : vector<8x4xi1>, vector<8x4xf32>
    %257 = arith.addf %242, %256 : vector<8x4xf32>
    %258 = math.tanh %257 : vector<8x4xf32>
    %cst_81 = arith.constant dense<0.000000e+00> : vector<8x133xf32>
    %259 = tpu.matmul %258, %0, %cst_81 {dimension_numbers = #tpu.dot_dimension_numbers<[1], [0], [0], [1], [0, 0, 1, 1], [], []>} : vector<8x4xf32>, vector<4x133xf32>, vector<8x133xf32> -> vector<8x133xf32>
    %260 = vector.extract_strided_slice %259 {offsets = [0, 132], sizes = [8, 1], strides = [1, 1]} : vector<8x133xf32> to vector<8x1xf32>
    %c0_82 = arith.constant 0 : index
    %c105 = arith.constant 105 : index
    %261 = vector.load %arg7[%c0_82, %c105] : memref<8x128xf32, #tpu.memory_space<vmem>>, vector<8x1xf32>
    tpu.vector_store %arg7[%c0_82, %c105], %260 {strides = array<i32>} : memref<8x128xf32, #tpu.memory_space<vmem>>, vector<8x1xf32>,
    %262 = vector.extract_strided_slice %259 {offsets = [0, 0], sizes = [8, 128], strides = [1, 1]} : vector<8x133xf32> to vector<8x128xf32>
    %263 = vector.broadcast %1 : vector<1x128xf32> to vector<8x128xf32>
    %264 = arith.addf %262, %263 : vector<8x128xf32>
    %cst_83 = arith.constant 0.000000e+00 : f32
    %265 = vector.broadcast %cst_83 : f32 to vector<8x128xf32>
    %266 = arith.maximumf %264, %265 : vector<8x128xf32>
    %267 = vector.extract_strided_slice %259 {offsets = [0, 128], sizes = [8, 4], strides = [1, 1]} : vector<8x133xf32> to vector<8x4xf32>
    %cst_84 = arith.constant dense<0.000000e+00> : vector<8x2xf32>
    %268 = tpu.matmul %266, %2, %cst_84 {dimension_numbers = #tpu.dot_dimension_numbers<[1], [0], [0], [1], [0, 0, 1, 1], [], []>} : vector<8x128xf32>, vector<128x2xf32>, vector<8x2xf32> -> vector<8x2xf32>
    %269 = vector.broadcast %3 : vector<1x2xf32> to vector<8x2xf32>
    %270 = arith.addf %268, %269 : vector<8x2xf32>
    %c0_85 = arith.constant 0 : index
    %c40 = arith.constant 40 : index
    %271 = vector.load %arg7[%c0_85, %c40] : memref<8x128xf32, #tpu.memory_space<vmem>>, vector<8x4xf32>
    tpu.vector_store %arg7[%c0_85, %c40], %258 {strides = array<i32>} : memref<8x128xf32, #tpu.memory_space<vmem>>, vector<8x4xf32>,
    %c0_86 = arith.constant 0 : index
    %c84 = arith.constant 84 : index
    %272 = vector.load %arg7[%c0_86, %c84] : memref<8x128xf32, #tpu.memory_space<vmem>>, vector<8x2xf32>
    tpu.vector_store %arg7[%c0_86, %c84], %270 {strides = array<i32>} : memref<8x128xf32, #tpu.memory_space<vmem>>, vector<8x2xf32>,
    %273 = vector.extract_strided_slice %270 {offsets = [0, 1], sizes = [8, 1], strides = [1, 1]} : vector<8x2xf32> to vector<8x1xf32>
    %274 = vector.extract_strided_slice %270 {offsets = [0, 0], sizes = [8, 1], strides = [1, 1]} : vector<8x2xf32> to vector<8x1xf32>
    %275 = arith.cmpf ogt, %273, %274 : vector<8x1xf32>
    %276 = arith.extui %275 : vector<8x1xi1> to vector<8x1xi32>
    %277 = arith.sitofp %276 : vector<8x1xi32> to vector<8x1xf32>
    %c0_87 = arith.constant 0 : index
    %c122 = arith.constant 122 : index
    %278 = vector.load %arg7[%c0_87, %c122] : memref<8x128xf32, #tpu.memory_space<vmem>>, vector<8x1xf32>
    tpu.vector_store %arg7[%c0_87, %c122], %277 {strides = array<i32>} : memref<8x128xf32, #tpu.memory_space<vmem>>, vector<8x1xf32>,
    %279 = vector.shape_cast %275 : vector<8x1xi1> to vector<8x1xi1>
    %280 = vector.broadcast %279 : vector<8x1xi1> to vector<8x4xi1>
    %281 = arith.select %280, %9, %6 : vector<8x4xi1>, vector<8x4xf32>
    %282 = arith.addf %267, %281 : vector<8x4xf32>
    %283 = math.tanh %282 : vector<8x4xf32>
    %cst_88 = arith.constant dense<0.000000e+00> : vector<8x133xf32>
    %284 = tpu.matmul %283, %0, %cst_88 {dimension_numbers = #tpu.dot_dimension_numbers<[1], [0], [0], [1], [0, 0, 1, 1], [], []>} : vector<8x4xf32>, vector<4x133xf32>, vector<8x133xf32> -> vector<8x133xf32>
    %285 = vector.extract_strided_slice %284 {offsets = [0, 132], sizes = [8, 1], strides = [1, 1]} : vector<8x133xf32> to vector<8x1xf32>
    %c0_89 = arith.constant 0 : index
    %c106 = arith.constant 106 : index
    %286 = vector.load %arg7[%c0_89, %c106] : memref<8x128xf32, #tpu.memory_space<vmem>>, vector<8x1xf32>
    tpu.vector_store %arg7[%c0_89, %c106], %285 {strides = array<i32>} : memref<8x128xf32, #tpu.memory_space<vmem>>, vector<8x1xf32>,
    %287 = vector.extract_strided_slice %284 {offsets = [0, 0], sizes = [8, 128], strides = [1, 1]} : vector<8x133xf32> to vector<8x128xf32>
    %288 = vector.broadcast %1 : vector<1x128xf32> to vector<8x128xf32>
    %289 = arith.addf %287, %288 : vector<8x128xf32>
    %cst_90 = arith.constant 0.000000e+00 : f32
    %290 = vector.broadcast %cst_90 : f32 to vector<8x128xf32>
    %291 = arith.maximumf %289, %290 : vector<8x128xf32>
    %292 = vector.extract_strided_slice %284 {offsets = [0, 128], sizes = [8, 4], strides = [1, 1]} : vector<8x133xf32> to vector<8x4xf32>
    %cst_91 = arith.constant dense<0.000000e+00> : vector<8x2xf32>
    %293 = tpu.matmul %291, %2, %cst_91 {dimension_numbers = #tpu.dot_dimension_numbers<[1], [0], [0], [1], [0, 0, 1, 1], [], []>} : vector<8x128xf32>, vector<128x2xf32>, vector<8x2xf32> -> vector<8x2xf32>
    %294 = vector.broadcast %3 : vector<1x2xf32> to vector<8x2xf32>
    %295 = arith.addf %293, %294 : vector<8x2xf32>
    %c0_92 = arith.constant 0 : index
    %c44 = arith.constant 44 : index
    %296 = vector.load %arg7[%c0_92, %c44] : memref<8x128xf32, #tpu.memory_space<vmem>>, vector<8x4xf32>
    tpu.vector_store %arg7[%c0_92, %c44], %283 {strides = array<i32>} : memref<8x128xf32, #tpu.memory_space<vmem>>, vector<8x4xf32>,
    %c0_93 = arith.constant 0 : index
    %c86 = arith.constant 86 : index
    %297 = vector.load %arg7[%c0_93, %c86] : memref<8x128xf32, #tpu.memory_space<vmem>>, vector<8x2xf32>
    tpu.vector_store %arg7[%c0_93, %c86], %295 {strides = array<i32>} : memref<8x128xf32, #tpu.memory_space<vmem>>, vector<8x2xf32>,
    %298 = vector.extract_strided_slice %295 {offsets = [0, 1], sizes = [8, 1], strides = [1, 1]} : vector<8x2xf32> to vector<8x1xf32>
    %299 = vector.extract_strided_slice %295 {offsets = [0, 0], sizes = [8, 1], strides = [1, 1]} : vector<8x2xf32> to vector<8x1xf32>
    %300 = arith.cmpf ogt, %298, %299 : vector<8x1xf32>
    %301 = arith.extui %300 : vector<8x1xi1> to vector<8x1xi32>
    %302 = arith.sitofp %301 : vector<8x1xi32> to vector<8x1xf32>
    %c0_94 = arith.constant 0 : index
    %c123 = arith.constant 123 : index
    %303 = vector.load %arg7[%c0_94, %c123] : memref<8x128xf32, #tpu.memory_space<vmem>>, vector<8x1xf32>
    tpu.vector_store %arg7[%c0_94, %c123], %302 {strides = array<i32>} : memref<8x128xf32, #tpu.memory_space<vmem>>, vector<8x1xf32>,
    %304 = vector.shape_cast %300 : vector<8x1xi1> to vector<8x1xi1>
    %305 = vector.broadcast %304 : vector<8x1xi1> to vector<8x4xi1>
    %306 = arith.select %305, %9, %6 : vector<8x4xi1>, vector<8x4xf32>
    %307 = arith.addf %292, %306 : vector<8x4xf32>
    %308 = math.tanh %307 : vector<8x4xf32>
    %cst_95 = arith.constant dense<0.000000e+00> : vector<8x133xf32>
    %309 = tpu.matmul %308, %0, %cst_95 {dimension_numbers = #tpu.dot_dimension_numbers<[1], [0], [0], [1], [0, 0, 1, 1], [], []>} : vector<8x4xf32>, vector<4x133xf32>, vector<8x133xf32> -> vector<8x133xf32>
    %310 = vector.extract_strided_slice %309 {offsets = [0, 132], sizes = [8, 1], strides = [1, 1]} : vector<8x133xf32> to vector<8x1xf32>
    %c0_96 = arith.constant 0 : index
    %c107 = arith.constant 107 : index
    %311 = vector.load %arg7[%c0_96, %c107] : memref<8x128xf32, #tpu.memory_space<vmem>>, vector<8x1xf32>
    tpu.vector_store %arg7[%c0_96, %c107], %310 {strides = array<i32>} : memref<8x128xf32, #tpu.memory_space<vmem>>, vector<8x1xf32>,
    %312 = vector.extract_strided_slice %309 {offsets = [0, 0], sizes = [8, 128], strides = [1, 1]} : vector<8x133xf32> to vector<8x128xf32>
    %313 = vector.broadcast %1 : vector<1x128xf32> to vector<8x128xf32>
    %314 = arith.addf %312, %313 : vector<8x128xf32>
    %cst_97 = arith.constant 0.000000e+00 : f32
    %315 = vector.broadcast %cst_97 : f32 to vector<8x128xf32>
    %316 = arith.maximumf %314, %315 : vector<8x128xf32>
    %317 = vector.extract_strided_slice %309 {offsets = [0, 128], sizes = [8, 4], strides = [1, 1]} : vector<8x133xf32> to vector<8x4xf32>
    %cst_98 = arith.constant dense<0.000000e+00> : vector<8x2xf32>
    %318 = tpu.matmul %316, %2, %cst_98 {dimension_numbers = #tpu.dot_dimension_numbers<[1], [0], [0], [1], [0, 0, 1, 1], [], []>} : vector<8x128xf32>, vector<128x2xf32>, vector<8x2xf32> -> vector<8x2xf32>
    %319 = vector.broadcast %3 : vector<1x2xf32> to vector<8x2xf32>
    %320 = arith.addf %318, %319 : vector<8x2xf32>
    %c0_99 = arith.constant 0 : index
    %c48 = arith.constant 48 : index
    %321 = vector.load %arg7[%c0_99, %c48] : memref<8x128xf32, #tpu.memory_space<vmem>>, vector<8x4xf32>
    tpu.vector_store %arg7[%c0_99, %c48], %308 {strides = array<i32>} : memref<8x128xf32, #tpu.memory_space<vmem>>, vector<8x4xf32>,
    %c0_100 = arith.constant 0 : index
    %c88 = arith.constant 88 : index
    %322 = vector.load %arg7[%c0_100, %c88] : memref<8x128xf32, #tpu.memory_space<vmem>>, vector<8x2xf32>
    tpu.vector_store %arg7[%c0_100, %c88], %320 {strides = array<i32>} : memref<8x128xf32, #tpu.memory_space<vmem>>, vector<8x2xf32>,
    %323 = vector.extract_strided_slice %320 {offsets = [0, 1], sizes = [8, 1], strides = [1, 1]} : vector<8x2xf32> to vector<8x1xf32>
    %324 = vector.extract_strided_slice %320 {offsets = [0, 0], sizes = [8, 1], strides = [1, 1]} : vector<8x2xf32> to vector<8x1xf32>
    %325 = arith.cmpf ogt, %323, %324 : vector<8x1xf32>
    %326 = arith.extui %325 : vector<8x1xi1> to vector<8x1xi32>
    %327 = arith.sitofp %326 : vector<8x1xi32> to vector<8x1xf32>
    %c0_101 = arith.constant 0 : index
    %c124 = arith.constant 124 : index
    %328 = vector.load %arg7[%c0_101, %c124] : memref<8x128xf32, #tpu.memory_space<vmem>>, vector<8x1xf32>
    tpu.vector_store %arg7[%c0_101, %c124], %327 {strides = array<i32>} : memref<8x128xf32, #tpu.memory_space<vmem>>, vector<8x1xf32>,
    %329 = vector.shape_cast %325 : vector<8x1xi1> to vector<8x1xi1>
    %330 = vector.broadcast %329 : vector<8x1xi1> to vector<8x4xi1>
    %331 = arith.select %330, %9, %6 : vector<8x4xi1>, vector<8x4xf32>
    %332 = arith.addf %317, %331 : vector<8x4xf32>
    %333 = math.tanh %332 : vector<8x4xf32>
    %cst_102 = arith.constant dense<0.000000e+00> : vector<8x133xf32>
    %334 = tpu.matmul %333, %0, %cst_102 {dimension_numbers = #tpu.dot_dimension_numbers<[1], [0], [0], [1], [0, 0, 1, 1], [], []>} : vector<8x4xf32>, vector<4x133xf32>, vector<8x133xf32> -> vector<8x133xf32>
    %335 = vector.extract_strided_slice %334 {offsets = [0, 132], sizes = [8, 1], strides = [1, 1]} : vector<8x133xf32> to vector<8x1xf32>
    %c0_103 = arith.constant 0 : index
    %c108 = arith.constant 108 : index
    %336 = vector.load %arg7[%c0_103, %c108] : memref<8x128xf32, #tpu.memory_space<vmem>>, vector<8x1xf32>
    tpu.vector_store %arg7[%c0_103, %c108], %335 {strides = array<i32>} : memref<8x128xf32, #tpu.memory_space<vmem>>, vector<8x1xf32>,
    %337 = vector.extract_strided_slice %334 {offsets = [0, 0], sizes = [8, 128], strides = [1, 1]} : vector<8x133xf32> to vector<8x128xf32>
    %338 = vector.broadcast %1 : vector<1x128xf32> to vector<8x128xf32>
    %339 = arith.addf %337, %338 : vector<8x128xf32>
    %cst_104 = arith.constant 0.000000e+00 : f32
    %340 = vector.broadcast %cst_104 : f32 to vector<8x128xf32>
    %341 = arith.maximumf %339, %340 : vector<8x128xf32>
    %342 = vector.extract_strided_slice %334 {offsets = [0, 128], sizes = [8, 4], strides = [1, 1]} : vector<8x133xf32> to vector<8x4xf32>
    %cst_105 = arith.constant dense<0.000000e+00> : vector<8x2xf32>
    %343 = tpu.matmul %341, %2, %cst_105 {dimension_numbers = #tpu.dot_dimension_numbers<[1], [0], [0], [1], [0, 0, 1, 1], [], []>} : vector<8x128xf32>, vector<128x2xf32>, vector<8x2xf32> -> vector<8x2xf32>
    %344 = vector.broadcast %3 : vector<1x2xf32> to vector<8x2xf32>
    %345 = arith.addf %343, %344 : vector<8x2xf32>
    %c0_106 = arith.constant 0 : index
    %c52 = arith.constant 52 : index
    %346 = vector.load %arg7[%c0_106, %c52] : memref<8x128xf32, #tpu.memory_space<vmem>>, vector<8x4xf32>
    tpu.vector_store %arg7[%c0_106, %c52], %333 {strides = array<i32>} : memref<8x128xf32, #tpu.memory_space<vmem>>, vector<8x4xf32>,
    %c0_107 = arith.constant 0 : index
    %c90 = arith.constant 90 : index
    %347 = vector.load %arg7[%c0_107, %c90] : memref<8x128xf32, #tpu.memory_space<vmem>>, vector<8x2xf32>
    tpu.vector_store %arg7[%c0_107, %c90], %345 {strides = array<i32>} : memref<8x128xf32, #tpu.memory_space<vmem>>, vector<8x2xf32>,
    %348 = vector.extract_strided_slice %345 {offsets = [0, 1], sizes = [8, 1], strides = [1, 1]} : vector<8x2xf32> to vector<8x1xf32>
    %349 = vector.extract_strided_slice %345 {offsets = [0, 0], sizes = [8, 1], strides = [1, 1]} : vector<8x2xf32> to vector<8x1xf32>
    %350 = arith.cmpf ogt, %348, %349 : vector<8x1xf32>
    %351 = arith.extui %350 : vector<8x1xi1> to vector<8x1xi32>
    %352 = arith.sitofp %351 : vector<8x1xi32> to vector<8x1xf32>
    %c0_108 = arith.constant 0 : index
    %c125 = arith.constant 125 : index
    %353 = vector.load %arg7[%c0_108, %c125] : memref<8x128xf32, #tpu.memory_space<vmem>>, vector<8x1xf32>
    tpu.vector_store %arg7[%c0_108, %c125], %352 {strides = array<i32>} : memref<8x128xf32, #tpu.memory_space<vmem>>, vector<8x1xf32>,
    %354 = vector.shape_cast %350 : vector<8x1xi1> to vector<8x1xi1>
    %355 = vector.broadcast %354 : vector<8x1xi1> to vector<8x4xi1>
    %356 = arith.select %355, %9, %6 : vector<8x4xi1>, vector<8x4xf32>
    %357 = arith.addf %342, %356 : vector<8x4xf32>
    %358 = math.tanh %357 : vector<8x4xf32>
    %cst_109 = arith.constant dense<0.000000e+00> : vector<8x133xf32>
    %359 = tpu.matmul %358, %0, %cst_109 {dimension_numbers = #tpu.dot_dimension_numbers<[1], [0], [0], [1], [0, 0, 1, 1], [], []>} : vector<8x4xf32>, vector<4x133xf32>, vector<8x133xf32> -> vector<8x133xf32>
    %360 = vector.extract_strided_slice %359 {offsets = [0, 132], sizes = [8, 1], strides = [1, 1]} : vector<8x133xf32> to vector<8x1xf32>
    %c0_110 = arith.constant 0 : index
    %c109 = arith.constant 109 : index
    %361 = vector.load %arg7[%c0_110, %c109] : memref<8x128xf32, #tpu.memory_space<vmem>>, vector<8x1xf32>
    tpu.vector_store %arg7[%c0_110, %c109], %360 {strides = array<i32>} : memref<8x128xf32, #tpu.memory_space<vmem>>, vector<8x1xf32>,
    %362 = vector.extract_strided_slice %359 {offsets = [0, 0], sizes = [8, 128], strides = [1, 1]} : vector<8x133xf32> to vector<8x128xf32>
    %363 = vector.broadcast %1 : vector<1x128xf32> to vector<8x128xf32>
    %364 = arith.addf %362, %363 : vector<8x128xf32>
    %cst_111 = arith.constant 0.000000e+00 : f32
    %365 = vector.broadcast %cst_111 : f32 to vector<8x128xf32>
    %366 = arith.maximumf %364, %365 : vector<8x128xf32>
    %367 = vector.extract_strided_slice %359 {offsets = [0, 128], sizes = [8, 4], strides = [1, 1]} : vector<8x133xf32> to vector<8x4xf32>
    %cst_112 = arith.constant dense<0.000000e+00> : vector<8x2xf32>
    %368 = tpu.matmul %366, %2, %cst_112 {dimension_numbers = #tpu.dot_dimension_numbers<[1], [0], [0], [1], [0, 0, 1, 1], [], []>} : vector<8x128xf32>, vector<128x2xf32>, vector<8x2xf32> -> vector<8x2xf32>
    %369 = vector.broadcast %3 : vector<1x2xf32> to vector<8x2xf32>
    %370 = arith.addf %368, %369 : vector<8x2xf32>
    %c0_113 = arith.constant 0 : index
    %c56 = arith.constant 56 : index
    %371 = vector.load %arg7[%c0_113, %c56] : memref<8x128xf32, #tpu.memory_space<vmem>>, vector<8x4xf32>
    tpu.vector_store %arg7[%c0_113, %c56], %358 {strides = array<i32>} : memref<8x128xf32, #tpu.memory_space<vmem>>, vector<8x4xf32>,
    %c0_114 = arith.constant 0 : index
    %c92 = arith.constant 92 : index
    %372 = vector.load %arg7[%c0_114, %c92] : memref<8x128xf32, #tpu.memory_space<vmem>>, vector<8x2xf32>
    tpu.vector_store %arg7[%c0_114, %c92], %370 {strides = array<i32>} : memref<8x128xf32, #tpu.memory_space<vmem>>, vector<8x2xf32>,
    %373 = vector.extract_strided_slice %370 {offsets = [0, 1], sizes = [8, 1], strides = [1, 1]} : vector<8x2xf32> to vector<8x1xf32>
    %374 = vector.extract_strided_slice %370 {offsets = [0, 0], sizes = [8, 1], strides = [1, 1]} : vector<8x2xf32> to vector<8x1xf32>
    %375 = arith.cmpf ogt, %373, %374 : vector<8x1xf32>
    %376 = arith.extui %375 : vector<8x1xi1> to vector<8x1xi32>
    %377 = arith.sitofp %376 : vector<8x1xi32> to vector<8x1xf32>
    %c0_115 = arith.constant 0 : index
    %c126 = arith.constant 126 : index
    %378 = vector.load %arg7[%c0_115, %c126] : memref<8x128xf32, #tpu.memory_space<vmem>>, vector<8x1xf32>
    tpu.vector_store %arg7[%c0_115, %c126], %377 {strides = array<i32>} : memref<8x128xf32, #tpu.memory_space<vmem>>, vector<8x1xf32>,
    %379 = vector.shape_cast %375 : vector<8x1xi1> to vector<8x1xi1>
    %380 = vector.broadcast %379 : vector<8x1xi1> to vector<8x4xi1>
    %381 = arith.select %380, %9, %6 : vector<8x4xi1>, vector<8x4xf32>
    %382 = arith.addf %367, %381 : vector<8x4xf32>
    %383 = math.tanh %382 : vector<8x4xf32>
    %cst_116 = arith.constant dense<0.000000e+00> : vector<8x133xf32>
    %384 = tpu.matmul %383, %0, %cst_116 {dimension_numbers = #tpu.dot_dimension_numbers<[1], [0], [0], [1], [0, 0, 1, 1], [], []>} : vector<8x4xf32>, vector<4x133xf32>, vector<8x133xf32> -> vector<8x133xf32>
    %385 = vector.extract_strided_slice %384 {offsets = [0, 132], sizes = [8, 1], strides = [1, 1]} : vector<8x133xf32> to vector<8x1xf32>
    %c0_117 = arith.constant 0 : index
    %c110 = arith.constant 110 : index
    %386 = vector.load %arg7[%c0_117, %c110] : memref<8x128xf32, #tpu.memory_space<vmem>>, vector<8x1xf32>
    tpu.vector_store %arg7[%c0_117, %c110], %385 {strides = array<i32>} : memref<8x128xf32, #tpu.memory_space<vmem>>, vector<8x1xf32>,
    %387 = vector.extract_strided_slice %384 {offsets = [0, 0], sizes = [8, 128], strides = [1, 1]} : vector<8x133xf32> to vector<8x128xf32>
    %388 = vector.broadcast %1 : vector<1x128xf32> to vector<8x128xf32>
    %389 = arith.addf %387, %388 : vector<8x128xf32>
    %cst_118 = arith.constant 0.000000e+00 : f32
    %390 = vector.broadcast %cst_118 : f32 to vector<8x128xf32>
    %391 = arith.maximumf %389, %390 : vector<8x128xf32>
    %392 = vector.extract_strided_slice %384 {offsets = [0, 128], sizes = [8, 4], strides = [1, 1]} : vector<8x133xf32> to vector<8x4xf32>
    %cst_119 = arith.constant dense<0.000000e+00> : vector<8x2xf32>
    %393 = tpu.matmul %391, %2, %cst_119 {dimension_numbers = #tpu.dot_dimension_numbers<[1], [0], [0], [1], [0, 0, 1, 1], [], []>} : vector<8x128xf32>, vector<128x2xf32>, vector<8x2xf32> -> vector<8x2xf32>
    %394 = vector.broadcast %3 : vector<1x2xf32> to vector<8x2xf32>
    %395 = arith.addf %393, %394 : vector<8x2xf32>
    %c0_120 = arith.constant 0 : index
    %c60 = arith.constant 60 : index
    %396 = vector.load %arg7[%c0_120, %c60] : memref<8x128xf32, #tpu.memory_space<vmem>>, vector<8x4xf32>
    tpu.vector_store %arg7[%c0_120, %c60], %383 {strides = array<i32>} : memref<8x128xf32, #tpu.memory_space<vmem>>, vector<8x4xf32>,
    %c0_121 = arith.constant 0 : index
    %c94 = arith.constant 94 : index
    %397 = vector.load %arg7[%c0_121, %c94] : memref<8x128xf32, #tpu.memory_space<vmem>>, vector<8x2xf32>
    tpu.vector_store %arg7[%c0_121, %c94], %395 {strides = array<i32>} : memref<8x128xf32, #tpu.memory_space<vmem>>, vector<8x2xf32>,
    %398 = vector.extract_strided_slice %395 {offsets = [0, 1], sizes = [8, 1], strides = [1, 1]} : vector<8x2xf32> to vector<8x1xf32>
    %399 = vector.extract_strided_slice %395 {offsets = [0, 0], sizes = [8, 1], strides = [1, 1]} : vector<8x2xf32> to vector<8x1xf32>
    %400 = arith.cmpf ogt, %398, %399 : vector<8x1xf32>
    %401 = arith.extui %400 : vector<8x1xi1> to vector<8x1xi32>
    %402 = arith.sitofp %401 : vector<8x1xi32> to vector<8x1xf32>
    %c0_122 = arith.constant 0 : index
    %c127 = arith.constant 127 : index
    %403 = vector.load %arg7[%c0_122, %c127] : memref<8x128xf32, #tpu.memory_space<vmem>>, vector<8x1xf32>
    tpu.vector_store %arg7[%c0_122, %c127], %402 {strides = array<i32>} : memref<8x128xf32, #tpu.memory_space<vmem>>, vector<8x1xf32>,
    %404 = vector.shape_cast %400 : vector<8x1xi1> to vector<8x1xi1>
    %405 = vector.broadcast %404 : vector<8x1xi1> to vector<8x4xi1>
    %406 = arith.select %405, %9, %6 : vector<8x4xi1>, vector<8x4xf32>
    %407 = arith.addf %392, %406 : vector<8x4xf32>
    %408 = math.tanh %407 : vector<8x4xf32>
    %cst_123 = arith.constant dense<0.000000e+00> : vector<8x133xf32>
    %409 = tpu.matmul %408, %0, %cst_123 {dimension_numbers = #tpu.dot_dimension_numbers<[1], [0], [0], [1], [0, 0, 1, 1], [], []>} : vector<8x4xf32>, vector<4x133xf32>, vector<8x133xf32> -> vector<8x133xf32>
    %410 = vector.extract_strided_slice %409 {offsets = [0, 132], sizes = [8, 1], strides = [1, 1]} : vector<8x133xf32> to vector<8x1xf32>
    %c0_124 = arith.constant 0 : index
    %c111 = arith.constant 111 : index
    %411 = vector.load %arg7[%c0_124, %c111] : memref<8x128xf32, #tpu.memory_space<vmem>>, vector<8x1xf32>
    tpu.vector_store %arg7[%c0_124, %c111], %410 {strides = array<i32>} : memref<8x128xf32, #tpu.memory_space<vmem>>, vector<8x1xf32>,
    return
  }
  func.func @transform_0(%arg0: i32) -> (i32, i32) {
    %c0_i32 = arith.constant 0 : i32
    %c0_i32_0 = arith.constant 0 : i32
    %c0_i32_1 = arith.constant 0 : i32
    return %c0_i32, %c0_i32_0 : i32, i32
  }
  func.func @transform_1(%arg0: i32) -> (i32, i32) {
    %c0_i32 = arith.constant 0 : i32
    %c0_i32_0 = arith.constant 0 : i32
    %c0_i32_1 = arith.constant 0 : i32
    return %c0_i32, %c0_i32_0 : i32, i32
  }
  func.func @transform_2(%arg0: i32) -> (i32, i32) {
    %c0_i32 = arith.constant 0 : i32
    %c0_i32_0 = arith.constant 0 : i32
    %c0_i32_1 = arith.constant 0 : i32
    return %c0_i32, %c0_i32_0 : i32, i32
  }
  func.func @transform_3(%arg0: i32) -> (i32, i32) {
    %c0_i32 = arith.constant 0 : i32
    %c0_i32_0 = arith.constant 0 : i32
    %c0_i32_1 = arith.constant 0 : i32
    return %c0_i32, %c0_i32_0 : i32, i32
  }
  func.func @transform_4(%arg0: i32) -> (i32, i32) {
    %c0_i32 = arith.constant 0 : i32
    %c0_i32_0 = arith.constant 0 : i32
    %c0_i32_1 = arith.constant 0 : i32
    return %c0_i32, %c0_i32_0 : i32, i32
  }
  func.func @transform_5(%arg0: i32) -> (i32, i32) {
    %c0_i32 = arith.constant 0 : i32
    %c0_i32_0 = arith.constant 0 : i32
    %c0_i32_1 = arith.constant 0 : i32
    return %c0_i32, %c0_i32_0 : i32, i32
  }
  func.func @transform_6(%arg0: i32) -> (i32, i32) {
    %c0_i32 = arith.constant 0 : i32
    %c0_i32_0 = arith.constant 0 : i32
    %c0_i32_1 = arith.constant 0 : i32
    return %c0_i32, %c0_i32_0 : i32, i32
  }
}

</mosaic_0001>

<bundles_post_ra>
// kernel: tpu_custom_call.1
= control target key start
LH: loop header
LB: loop body
LE: loop exit
PB: predicated region body
PF: predicated region fallthrough
CT: control target
= control target key end

     0   :  { %vm52_vm0 = vcmask 31744   ;;  %vm56_vm1 = vcmask 1043456   ;;  %s3174_s0 = inlined_call_operand.vmem [shape: f32[8,4], index: 0, kind: input, shape index: {}]   ;;  %s3175_s1 = inlined_call_operand.vmem [shape: f32[4,133], index: 1, kind: input, shape index: {}]   ;;  %s3176_s2 = inlined_call_operand.vmem [shape: f32[1,128], index: 2, kind: input, shape index: {}]   ;;  %s3177_s3 = inlined_call_operand.vmem [shape: f32[128,2], index: 3, kind: input, shape index: {}]   ;;  %s3178_s4 = inlined_call_operand.vmem [shape: f32[1,2], index: 4, kind: input, shape index: {}]   ;;  %s3179_s5 = inlined_call_operand.vmem [shape: f32[2,4], index: 5, kind: input, shape index: {}]   ;;  %s3180_s6 = inlined_call_operand.hbm [shape: f32[8,128], index: 6, kind: output, shape index: {}]  }
   0x1   :  { %v2161_v0 = vld [vmem:[%s3175_s1] sm:$0xff]  ;;  %v2166_v1 = vld [vmem:[%s3177_s3 + $0x78] sm:$0xff]  ;;  %v2178_v3 = vld [vmem:[%s3177_s3 + $0x70] sm:$0xff] }
   0x2   :  { %49 = vst [vmem:[#allocation1] ss:$2 sm:$0xff] %v2161_v0  ;;  %v2172_v2 = vld [vmem:[%s3174_s0] sm:$0xff]  ;;  %109 = vmatpush.msra.mxu2 %v2166_v1  ;;  %v2185_v4 = vld [vmem:[%s3177_s3 + $0x68] sm:$0xff]  ;;  %v2197_v6 = vld [vmem:[%s3177_s3 + $0x58] sm:$0xff] }
   0x3   :  { %129 = vst.msk [vmem:[#allocation2] sm:$0xff] %vm52_vm0, %v2172_v2  ;;  %v2191_v5 = vld [vmem:[%s3177_s3 + $0x60] sm:$0xff] }
   0x4   :  { %110 = vmatpush.msra.mxu2 %v2178_v3 }
   0x6   :  { %111 = vmatpush.msra.mxu2 %v2185_v4 }
   0x7   :  { %11 = vsyncpa [#allocation3], 0  ;;  %v2203_v8 = vld [vmem:[%s3177_s3 + $0x50] sm:$0xff]  ;;  %v2212_v9 = vld [vmem:[%s3177_s3 + $0x48] sm:$0xff]  ;;  %s2057_s9 = smov 1   ;;  %v2058_v27 = vmov 1  }
   0x8   :  { %112 = vmatpush.msra.mxu2 %v2191_v5  ;;  %v2218_v10 = vld [vmem:[%s3177_s3 + $0x40] sm:$0xff]  ;;  %v2224_v11 = vld [vmem:[%s3177_s3 + $0x38] sm:$0xff]  ;;  %v2230_v12 = vld [vmem:[%s3177_s3 + $0x30] sm:$0xff]  ;;  %1972 = vset.pattern.permute.xlu0 %v2058_v27  ;;  %v3181_v29 = vmov 0   ;;  %s2060_s23 = smov 64   ;;  %s2062_s24 = smov 93  }
   0x9   :  { %v50_v7 = vld.sshfl [vmem:[#allocation1] sm:$0xff pattern:$0x75316420]  ;;  %v2236_v13 = vld [vmem:[%s3177_s3 + $0x28] sm:$0xff]  ;;  %v2248_v15 = vld [vmem:[%s3177_s3 + $0x18] sm:$0xff]  ;;  %1973 = vset.pattern.permute.xlu1 %v2058_v27  ;;  %1974 = vset.pattern.permute.xlu2 %v2058_v27  ;;  %s2064_s25 = smov 113  }
   0xa   :  { %1824 = vmatpush.msk.msra.mxu0 %vm56_vm1, %v50_v7  ;;  %113 = vmatpush.msra.mxu2 %v2197_v6  ;;  %v2242_v14 = vld [vmem:[%s3177_s3 + $0x20] sm:$0xff]  ;;  %v2255_v16 = vld [vmem:[%s3177_s3 + $0x10] sm:$0xff]  ;;  %v2261_v17 = vld [vmem:[%s3177_s3 + $0x8] sm:$0xff]  ;;  %s2065_s26 = smov 70   ;;  %s2066_s27 = smov 16  }
   0xb   :  { %1825 = vmatmul.msk.f32.vlgmr.msra.gmra.mxu0 %vm52_vm0, %v2172_v2  ;;  %v2267_v18 = vld [vmem:[%s3177_s3] sm:$0xff]  ;;  %v51_v23 = vld.sshfl [vmem:[#allocation1 + $0x8] sm:$0xff pattern:$0x75316420]  ;;  %s2067_s28 = smov 96   ;;  %s2068_s1 = smov 116  }
   0xc   :  { %114 = vmatpush.msra.mxu2 %v2203_v8  ;;  %v2285_v19 = vld [vmem:[%s3176_s2] ss:$0 sm:$0xff]  ;;  %1826 = vmatpush.msk.msra.mxu1 %vm56_vm1, %v51_v23  ;;  %155 = vst [vmem:[#allocation1] ss:$2 sm:$0xff] %v2161_v0  ;;  %v2353_v34 = vld [vmem:[%s3179_s5 + $0x1] ss:$0 sm:$0xff] }
   0xd   :  { %1827 = vmatmul.msk.f32.vlgmr.msra.gmra.mxu1 %vm52_vm0, %v2172_v2  ;;  %v2315_v24 = vld [vmem:[%s3178_s4] ss:$0 sm:$0xff]  ;;  %s2069_s29 = smov 76   ;;  %s2070_s0 = smov 28  }
   0xe   :  { %115 = vmatpush.msra.mxu2 %v2212_v9  ;;  %v2348_v33 = vld [vmem:[%s3179_s5] ss:$0 sm:$0xff]  ;;  %s2071_s30 = smov 99   ;;  %s2072_s7 = smov 119  }
   0xf   :  { %s2073_s8 = smov 82   ;;  %s2074_s10 = smov 40  }
  0x10   :  { %116 = vmatpush.msra.mxu2 %v2218_v10  ;;  %s2075_s15 = smov 102   ;;  %s2077_s16 = smov 88  }
  0x11   :  { %s2078_s17 = smov 52   ;;  %s2079_s18 = smov 105  }
  0x12   :  { %117 = vmatpush.msra.mxu2 %v2224_v11  ;;  %s2080_s19 = smov 125   ;;  %s2081_s20 = smov 94  }
  0x13   :  { %v156_v31 = vld.sshfl [vmem:[#allocation1] sm:$0xff pattern:$0x75316420]  ;;  %v157_v32 = vld.sshfl [vmem:[#allocation1 + $0x8] sm:$0xff pattern:$0x75316420] }
  0x14   :  { %118 = vmatpush.msra.mxu2 %v2230_v12  ;;  %1829 = vmatpush.msk.msrb.mxu1 %vm56_vm1, %v156_v31  ;;  %263 = vst [vmem:[#allocation1] ss:$2 sm:$0xff] %v2161_v0  ;;  %s2082_s21 = smov 111   ;;  %s2083_s22 = smov 66  }
  0x15   :  { %1831 = vmatpush.msk.msrb.mxu0 %vm56_vm1, %v157_v32  ;;  %s2101_s11 = smov 90   ;;  %s2102_s12 = smov 12  }
  0x16   :  { %119 = vmatpush.msra.mxu2 %v2236_v13  ;;  %213 = vmatpush.msra.mxu1 %v2166_v1  ;;  %s2103_s13 = smov 56   ;;  %s2104_s14 = smov 95  }
  0x18   :  { %120 = vmatpush.msra.mxu2 %v2242_v14  ;;  %214 = vmatpush.msra.mxu1 %v2178_v3 }
  0x1a   :  { %121 = vmatpush.msra.mxu2 %v2248_v15  ;;  %215 = vmatpush.msra.mxu1 %v2185_v4 }
  0x1b   :  { %v264_v47 = vld.sshfl [vmem:[#allocation1] sm:$0xff pattern:$0x75316420]  ;;  %v265_v48 = vld.sshfl [vmem:[#allocation1 + $0x8] sm:$0xff pattern:$0x75316420] }
  0x1c   :  { %122 = vmatpush.msra.mxu2 %v2255_v16  ;;  %216 = vmatpush.msra.mxu1 %v2191_v5  ;;  %371 = vst [vmem:[#allocation1] ss:$2 sm:$0xff] %v2161_v0 }
  0x1d   :  { %1834 = vmatpush.msk.msra.mxu3 %vm56_vm1, %v264_v47  ;;  %1836 = vmatpush.msk.msra.mxu0 %vm56_vm1, %v265_v48 }
  0x1e   :  { %123 = vmatpush.msra.mxu2 %v2261_v17  ;;  %217 = vmatpush.msra.mxu1 %v2197_v6 }
  0x1f   :  { %321 = vmatpush.msrb.mxu3 %v2166_v1 }
  0x20   :  { %124 = vmatpush.msra.mxu2 %v2267_v18  ;;  %218 = vmatpush.msra.mxu1 %v2203_v8 }
  0x21   :  { %322 = vmatpush.msrb.mxu3 %v2178_v3 }
  0x22   :  { %429 = vmatpush.msrb.mxu2 %v2166_v1  ;;  %219 = vmatpush.msra.mxu1 %v2212_v9 }
  0x23   :  { %323 = vmatpush.msrb.mxu3 %v2185_v4  ;;  %v372_v61 = vld.sshfl [vmem:[#allocation1] sm:$0xff pattern:$0x75316420]  ;;  %v373_v62 = vld.sshfl [vmem:[#allocation1 + $0x8] sm:$0xff pattern:$0x75316420] }
  0x24   :  { %430 = vmatpush.msrb.mxu2 %v2178_v3  ;;  %220 = vmatpush.msra.mxu1 %v2218_v10  ;;  %479 = vst [vmem:[#allocation1] ss:$2 sm:$0xff] %v2161_v0 }
  0x25   :  { %324 = vmatpush.msrb.mxu3 %v2191_v5 }
  0x26   :  { %431 = vmatpush.msrb.mxu2 %v2185_v4  ;;  %221 = vmatpush.msra.mxu1 %v2224_v11 }
  0x27   :  { %325 = vmatpush.msrb.mxu3 %v2197_v6 }
  0x28   :  { %432 = vmatpush.msrb.mxu2 %v2191_v5  ;;  %222 = vmatpush.msra.mxu1 %v2230_v12 }
  0x29   :  { %326 = vmatpush.msrb.mxu3 %v2203_v8 }
  0x2a   :  { %433 = vmatpush.msrb.mxu2 %v2197_v6  ;;  %223 = vmatpush.msra.mxu1 %v2236_v13 }
  0x2b   :  { %327 = vmatpush.msrb.mxu3 %v2212_v9 }
  0x2c   :  { %434 = vmatpush.msrb.mxu2 %v2203_v8  ;;  %224 = vmatpush.msra.mxu1 %v2242_v14 }
  0x2d   :  { %328 = vmatpush.msrb.mxu3 %v2218_v10 }
  0x2e   :  { %435 = vmatpush.msrb.mxu2 %v2212_v9  ;;  %225 = vmatpush.msra.mxu1 %v2248_v15 }
  0x2f   :  { %329 = vmatpush.msrb.mxu3 %v2224_v11 }
  0x30   :  { %436 = vmatpush.msrb.mxu2 %v2218_v10  ;;  %226 = vmatpush.msra.mxu1 %v2255_v16 }
  0x31   :  { %330 = vmatpush.msrb.mxu3 %v2230_v12 }
  0x32   :  { %437 = vmatpush.msrb.mxu2 %v2224_v11  ;;  %227 = vmatpush.msra.mxu1 %v2261_v17 }
  0x33   :  { %331 = vmatpush.msrb.mxu3 %v2236_v13 }
  0x34   :  { %438 = vmatpush.msrb.mxu2 %v2230_v12  ;;  %228 = vmatpush.msra.mxu1 %v2267_v18 }
  0x35   :  { %332 = vmatpush.msrb.mxu3 %v2242_v14 }
  0x36   :  { %439 = vmatpush.msrb.mxu2 %v2236_v13 }
  0x37   :  { %333 = vmatpush.msrb.mxu3 %v2248_v15 }
  0x38   :  { %440 = vmatpush.msrb.mxu2 %v2242_v14 }
  0x39   :  { %334 = vmatpush.msrb.mxu3 %v2255_v16 }
  0x3a   :  { %441 = vmatpush.msrb.mxu2 %v2248_v15 }
  0x3b   :  { %335 = vmatpush.msrb.mxu3 %v2261_v17 }
  0x3c   :  { %442 = vmatpush.msrb.mxu2 %v2255_v16 }
  0x3d   :  { %336 = vmatpush.msrb.mxu3 %v2267_v18 }
  0x3e   :  { %443 = vmatpush.msrb.mxu2 %v2261_v17 }
  0x40   :  { %444 = vmatpush.msrb.mxu2 %v2267_v18 }
  0x88   :  { %v78_v20 = vpop.f32.mrf.mxu0 }
  0x89   :  { %v104_v21 = vadd.f32 %v2285_v19, %v78_v20 }
  0x8a   :  { %v98_v36 = vpop.f32.mrf.mxu1 }
  0x8b   :  { %v105_v22 = vmax.f32 %v104_v21, 0.0 }
  0x8d   :  { %125 = vmatmul.f32.vlgmr.msra.gmra.mxu2 %v105_v22 }
  0x8e   :  { %753 = vmatpush.msra.mxu2 %v2166_v1 }
  0x90   :  { %754 = vmatpush.msra.mxu2 %v2178_v3 }
  0x92   :  { %755 = vmatpush.msra.mxu2 %v2185_v4 }
  0x94   :  { %756 = vmatpush.msra.mxu2 %v2191_v5 }
  0x96   :  { %757 = vmatpush.msra.mxu2 %v2197_v6 }
  0x98   :  { %758 = vmatpush.msra.mxu2 %v2203_v8 }
  0x9a   :  { %759 = vmatpush.msra.mxu2 %v2212_v9 }
  0x9c   :  { %760 = vmatpush.msra.mxu2 %v2218_v10 }
  0x9e   :  { %761 = vmatpush.msra.mxu2 %v2224_v11 }
  0xa0   :  { %762 = vmatpush.msra.mxu2 %v2230_v12 }
  0xa2   :  { %763 = vmatpush.msra.mxu2 %v2236_v13 }
  0xa4   :  { %764 = vmatpush.msra.mxu2 %v2242_v14 }
  0xa6   :  { %765 = vmatpush.msra.mxu2 %v2248_v15 }
  0xa8   :  { %766 = vmatpush.msra.mxu2 %v2255_v16 }
  0xaa   :  { %767 = vmatpush.msra.mxu2 %v2261_v17 }
  0xac   :  { %768 = vmatpush.msra.mxu2 %v2267_v18 }
 0x110   :  { %v126_v25 = vpop.f32.mrf.mxu2 }
 0x111   :  { %v2318_v26 = vadd.f32 %v2315_v24, %v126_v25 }
 0x113   :  { %136 = vrot.lane.b32.xlu0 %v2318_v26, %s2057_s9 }
 0x185   :  { %v2322_v28 = vpop.permute.xlu0 %136 }
 0x186   :  { %vm139_vm2 = vcmp.gt.f32.partialorder %v2318_v26, %v2322_v28 }
 0x187   :  { %v140_v30 = vsel %vm139_vm2, 1, %v3181_v29 }
 0x188   :  { %149 = vperm.xlu0 %1972, %v140_v30  }
 0x1fa   :  { %v150_v35 = vpop.permute.xlu0 %149 }
 0x1fb   :  { %vm151_vm3 = vcmp.eq.s32.totalorder %v150_v35, 1  ;;  %v480_v35 = vld.sshfl [vmem:[#allocation1] sm:$0xff pattern:$0x75316420] }
 0x1fc   :  { %v152_v37 = vsel %vm151_vm3, %v2353_v34, %v2348_v33 }
 0x1fd   :  { %v153_v38 = vadd.f32 %v152_v37, %v98_v36  ;;  %v481_v36 = vld.sshfl [vmem:[#allocation1 + $0x8] sm:$0xff pattern:$0x75316420] }
 0x1fe   :  { %587 = vst [vmem:[#allocation1] ss:$2 sm:$0xff] %v2161_v0 }
 0x1ff   :  { %1979 = vtanh.f32 %v153_v38 }
 0x205   :  { %v2361_v39 = vpop.eup %1979 }
 0x206   :  { %1830 = vmatmul.msk.f32.vlgmr.msrb.gmra.mxu1 %vm52_vm0, %v2361_v39  ;;  %1832 = vmatmul.msk.f32.vlgmr.msrb.gmra.mxu0 %vm52_vm0, %v2361_v39 }
 0x207   :  { %1839 = vmatpush.msk.msrb.mxu0 %vm56_vm1, %v372_v61  ;;  %1846 = vmatpush.msk.msrb.mxu1 %vm56_vm1, %v481_v36 }
 0x283   :  { %v182_v40 = vpop.f32.mrf.mxu1  ;;  %v2398_v50 = vpop.f32.mrf.mxu0 }
 0x284   :  { %v211_v41 = vadd.f32 %v2285_v19, %v182_v40  ;;  %3203 = vst [vmem:[#allocation6_spill] sm:$0xff] %v2398_v50 }
 0x286   :  { %v212_v42 = vmax.f32 %v211_v41, 0.0 }
 0x288   :  { %229 = vmatmul.f32.vlgmr.msra.gmra.mxu1 %v212_v42 }
 0x305   :  { %v230_v43 = vpop.f32.mrf.mxu1 }
 0x306   :  { %v2369_v44 = vadd.f32 %v2315_v24, %v230_v43 }
 0x308   :  { %244 = vrot.lane.b32.xlu1 %v2369_v44, %s2057_s9 }
 0x37a   :  { %v2373_v45 = vpop.permute.xlu1 %244 }
 0x37b   :  { %3202 = vst [vmem:[#allocation5_spill] sm:$0xff] %v2373_v45  ;;  %vm247_vm4 = vcmp.gt.f32.partialorder %v2369_v44, %v2373_v45 }
 0x37c   :  { %v248_v46 = vsel %vm247_vm4, 1, %v3181_v29 }
 0x37d   :  { %257 = vperm.xlu1 %1973, %v248_v46  }
 0x3ef   :  { %v258_v49 = vpop.permute.xlu1 %257 }
 0x3f0   :  { %vm259_vm5 = vcmp.eq.s32.totalorder %v258_v49, 1 }
 0x3f1   :  { %v260_v51 = vsel %vm259_vm5, %v2353_v34, %v2348_v33 }
 0x3f2   :  { %v261_v52 = vadd.f32 %v260_v51, %v2398_v50 }
 0x3f4   :  { %1981 = vtanh.f32 %v261_v52 }
 0x3fa   :  { %v2405_v53 = vpop.eup %1981 }
 0x3fb   :  { %1835 = vmatmul.msk.f32.vlgmr.msra.gmra.mxu3 %vm52_vm0, %v2405_v53  ;;  %1837 = vmatmul.msk.f32.vlgmr.msra.gmra.mxu0 %vm52_vm0, %v2405_v53 }
 0x3fc   :  { %1841 = vmatpush.msk.msra.mxu0 %vm56_vm1, %v373_v62 }
 0x478   :  { %v2428_v2 = vpop.f32.mrf.mxu0 }
 0x47e   :  { %v290_v54 = vpop.f32.mrf.mxu3 }
 0x47f   :  { %v319_v55 = vadd.f32 %v2285_v19, %v290_v54  ;;  %v588_v54 = vld.sshfl [vmem:[#allocation1] sm:$0xff pattern:$0x75316420] }
 0x480   :  { %1849 = vmatpush.msk.msra.mxu1 %vm56_vm1, %v588_v54 }
 0x481   :  { %v320_v56 = vmax.f32 %v319_v55, 0.0  ;;  %v589_v55 = vld.sshfl [vmem:[#allocation1 + $0x8] sm:$0xff pattern:$0x75316420] }
 0x482   :  { %1851 = vmatpush.msk.msra.mxu3 %vm56_vm1, %v589_v55  ;;  %695 = vst [vmem:[#allocation1] ss:$2 sm:$0xff] %v2161_v0 }
 0x483   :  { %337 = vmatmul.f32.vlgmr.msrb.gmra.mxu3 %v320_v56 }
 0x506   :  { %v338_v57 = vpop.f32.mrf.mxu3 }
 0x507   :  { %v2413_v58 = vadd.f32 %v2315_v24, %v338_v57 }
 0x509   :  { %352 = vrot.lane.b32.xlu2 %v2413_v58, %s2057_s9 }
 0x563   :  { %v2417_v59 = vpop.permute.xlu2 %352 }
 0x564   :  { %vm355_vm6 = vcmp.gt.f32.partialorder %v2413_v58, %v2417_v59 }
 0x565   :  { %v356_v60 = vsel %vm355_vm6, 1, %v3181_v29 }
 0x566   :  { %365 = vperm.xlu2 %1974, %v356_v60  }
 0x5c0   :  { %v366_v63 = vpop.permute.xlu2 %365 }
 0x5c1   :  { %vm367_vm7 = vcmp.eq.s32.totalorder %v366_v63, 1 }
 0x5c2   :  { %v368_v7 = vsel %vm367_vm7, %v2353_v34, %v2348_v33 }
 0x5c3   :  { %v369_v20 = vadd.f32 %v368_v7, %v2428_v2 }
 0x5c5   :  { %1983 = vtanh.f32 %v369_v20 }
 0x5cb   :  { %v2433_v21 = vpop.eup %1983 }
 0x5cc   :  { %3204 = vst [vmem:[#allocation7_spill] sm:$0xff] %v2433_v21  ;;  %1840 = vmatmul.msk.f32.vlgmr.msrb.gmra.mxu0 %vm52_vm0, %v2433_v21 }
 0x5cd   :  { %1844 = vmatpush.msk.msrb.mxu0 %vm56_vm1, %v480_v35  ;;  %v697_v35 = vld.sshfl [vmem:[#allocation1 + $0x8] sm:$0xff pattern:$0x75316420] }
 0x5d4   :  { %1842 = vmatmul.msk.f32.vlgmr.msra.gmra.mxu0 %vm52_vm0, %v2433_v21 }
 0x5d5   :  { %537 = vmatpush.msra.mxu0 %v2166_v1 }
 0x5d7   :  { %538 = vmatpush.msra.mxu0 %v2178_v3 }
 0x5d9   :  { %539 = vmatpush.msra.mxu0 %v2185_v4 }
 0x5db   :  { %540 = vmatpush.msra.mxu0 %v2191_v5 }
 0x5dd   :  { %541 = vmatpush.msra.mxu0 %v2197_v6 }
 0x5df   :  { %542 = vmatpush.msra.mxu0 %v2203_v8 }
 0x5e1   :  { %543 = vmatpush.msra.mxu0 %v2212_v9 }
 0x5e3   :  { %544 = vmatpush.msra.mxu0 %v2218_v10 }
 0x5e5   :  { %545 = vmatpush.msra.mxu0 %v2224_v11 }
 0x5e7   :  { %546 = vmatpush.msra.mxu0 %v2230_v12 }
 0x5e9   :  { %547 = vmatpush.msra.mxu0 %v2236_v13 }
 0x5eb   :  { %548 = vmatpush.msra.mxu0 %v2242_v14 }
 0x5ed   :  { %549 = vmatpush.msra.mxu0 %v2248_v15 }
 0x5ef   :  { %550 = vmatpush.msra.mxu0 %v2255_v16 }
 0x5f1   :  { %551 = vmatpush.msra.mxu0 %v2261_v17 }
 0x5f3   :  { %552 = vmatpush.msra.mxu0 %v2267_v18 }
 0x649   :  { %v398_v22 = vpop.f32.mrf.mxu0 }
 0x64a   :  { %v427_v23 = vadd.f32 %v2285_v19, %v398_v22 }
 0x64c   :  { %v428_v25 = vmax.f32 %v427_v23, 0.0 }
 0x64e   :  { %445 = vmatmul.f32.vlgmr.msrb.gmra.mxu2 %v428_v25 }
 0x651   :  { %v2470_v38 = vpop.f32.mrf.mxu0 }
 0x6d1   :  { %v446_v27 = vpop.f32.mrf.mxu2 }
 0x6d2   :  { %v2441_v30 = vadd.f32 %v2315_v24, %v446_v27 }
 0x6d4   :  { %460 = vrot.lane.b32.xlu1 %v2441_v30, %s2057_s9 }
 0x746   :  { %v2445_v31 = vpop.permute.xlu1 %460 }
 0x747   :  { %vm463_vm8 = vcmp.gt.f32.partialorder %v2441_v30, %v2445_v31 }
 0x748   :  { %v464_v32 = vsel %vm463_vm8, 1, %v3181_v29 }
 0x749   :  { %473 = vperm.xlu2 %1974, %v464_v32   ;;  %v696_v32 = vld.sshfl [vmem:[#allocation1] sm:$0xff pattern:$0x75316420] }
 0x74a   :  { %1854 = vmatpush.msk.msrb.mxu3 %vm56_vm1, %v696_v32  ;;  %803 = vst [vmem:[#allocation1] ss:$2 sm:$0xff] %v2161_v0 }
 0x7a3   :  { %v474_v37 = vpop.permute.xlu2 %473 }
 0x7a4   :  { %vm475_vm9 = vcmp.eq.s32.totalorder %v474_v37, 1 }
 0x7a5   :  { %v476_v40 = vsel %vm475_vm9, %v2353_v34, %v2348_v33 }
 0x7a6   :  { %v477_v41 = vadd.f32 %v476_v40, %v2470_v38 }
 0x7a8   :  { %1985 = vtanh.f32 %v477_v41 }
 0x7ae   :  { %v2477_v42 = vpop.eup %1985 }
 0x7af   :  { %1845 = vmatmul.msk.f32.vlgmr.msrb.gmra.mxu0 %vm52_vm0, %v2477_v42  ;;  %1847 = vmatmul.msk.f32.vlgmr.msrb.gmra.mxu1 %vm52_vm0, %v2477_v42 }
 0x7b0   :  { %645 = vmatpush.msrb.mxu1 %v2166_v1 }
 0x7b2   :  { %646 = vmatpush.msrb.mxu1 %v2178_v3 }
 0x7b4   :  { %647 = vmatpush.msrb.mxu1 %v2185_v4 }
 0x7b6   :  { %648 = vmatpush.msrb.mxu1 %v2191_v5 }
 0x7b8   :  { %649 = vmatpush.msrb.mxu1 %v2197_v6 }
 0x7ba   :  { %650 = vmatpush.msrb.mxu1 %v2203_v8 }
 0x7bc   :  { %651 = vmatpush.msrb.mxu1 %v2212_v9 }
 0x7be   :  { %652 = vmatpush.msrb.mxu1 %v2218_v10 }
 0x7c0   :  { %653 = vmatpush.msrb.mxu1 %v2224_v11 }
 0x7c2   :  { %654 = vmatpush.msrb.mxu1 %v2230_v12 }
 0x7c4   :  { %655 = vmatpush.msrb.mxu1 %v2236_v13 }
 0x7c6   :  { %656 = vmatpush.msrb.mxu1 %v2242_v14 }
 0x7c8   :  { %657 = vmatpush.msrb.mxu1 %v2248_v15 }
 0x7ca   :  { %658 = vmatpush.msrb.mxu1 %v2255_v16 }
 0x7cc   :  { %659 = vmatpush.msrb.mxu1 %v2261_v17 }
 0x7ce   :  { %660 = vmatpush.msrb.mxu1 %v2267_v18 }
 0x82c   :  { %v506_v43 = vpop.f32.mrf.mxu0  ;;  %v2514_v57 = vpop.f32.mrf.mxu1 }
 0x82d   :  { %v535_v46 = vadd.f32 %v2285_v19, %v506_v43  ;;  %3206 = vst [vmem:[#allocation9_spill] sm:$0xff] %v2514_v57 }
 0x82f   :  { %v536_v47 = vmax.f32 %v535_v46, 0.0 }
 0x831   :  { %553 = vmatmul.f32.vlgmr.msra.gmra.mxu0 %v536_v47 }
 0x8ae   :  { %v554_v48 = vpop.f32.mrf.mxu0 }
 0x8af   :  { %v2485_v49 = vadd.f32 %v2315_v24, %v554_v48 }
 0x8b1   :  { %568 = vrot.lane.b32.xlu0 %v2485_v49, %s2057_s9 }
 0x923   :  { %v2489_v51 = vpop.permute.xlu0 %568 }
 0x924   :  { %3205 = vst [vmem:[#allocation8_spill] sm:$0xff] %v2489_v51  ;;  %vm571_vm10 = vcmp.gt.f32.partialorder %v2485_v49, %v2489_v51 }
 0x925   :  { %v572_v52 = vsel %vm571_vm10, 1, %v3181_v29 }
 0x926   :  { %581 = vperm.xlu1 %1973, %v572_v52  }
 0x998   :  { %v582_v56 = vpop.permute.xlu1 %581 }
 0x999   :  { %vm583_vm11 = vcmp.eq.s32.totalorder %v582_v56, 1 }
 0x99a   :  { %v584_v60 = vsel %vm583_vm11, %v2353_v34, %v2348_v33 }
 0x99b   :  { %v585_v61 = vadd.f32 %v584_v60, %v2514_v57  ;;  %v804_v60 = vld.sshfl [vmem:[#allocation1] sm:$0xff pattern:$0x75316420]  ;;  %v2928_v57 = vld [vmem:[%s3177_s3 + $0x8] sm:$0xff] }
 0x99d   :  { %1987 = vtanh.f32 %v585_v61  ;;  %v805_v61 = vld.sshfl [vmem:[#allocation1 + $0x8] sm:$0xff pattern:$0x75316420] }
 0x99e   :  { %1861 = vmatpush.msk.msrb.mxu0 %vm56_vm1, %v805_v61  ;;  %911 = vst [vmem:[#allocation1] ss:$2 sm:$0xff] %v2161_v0 }
 0x9a3   :  { %v2521_v62 = vpop.eup %1987 }
 0x9a4   :  { %1850 = vmatmul.msk.f32.vlgmr.msra.gmra.mxu1 %vm52_vm0, %v2521_v62  ;;  %1852 = vmatmul.msk.f32.vlgmr.msra.gmra.mxu3 %vm52_vm0, %v2521_v62 }
 0x9a5   :  { %1856 = vmatpush.msk.msra.mxu3 %vm56_vm1, %v697_v35 }
 0xa21   :  { %v614_v63 = vpop.f32.mrf.mxu1 }
 0xa22   :  { %v643_v7 = vadd.f32 %v2285_v19, %v614_v63 }
 0xa24   :  { %v644_v20 = vmax.f32 %v643_v7, 0.0 }
 0xa26   :  { %661 = vmatmul.f32.vlgmr.msrb.gmra.mxu1 %v644_v20 }
 0xa27   :  { %v2544_v37 = vpop.f32.mrf.mxu3 }
 0xaa3   :  { %v662_v22 = vpop.f32.mrf.mxu1 }
 0xaa4   :  { %v2529_v23 = vadd.f32 %v2315_v24, %v662_v22 }
 0xaa6   :  { %676 = vrot.lane.b32.xlu2 %v2529_v23, %s2057_s9 }
 0xb00   :  { %v2533_v25 = vpop.permute.xlu2 %676 }
 0xb01   :  { %vm679_vm12 = vcmp.gt.f32.partialorder %v2529_v23, %v2533_v25 }
 0xb02   :  { %v680_v27 = vsel %vm679_vm12, 1, %v3181_v29 }
 0xb03   :  { %689 = vperm.xlu0 %1972, %v680_v27  }
 0xb75   :  { %v690_v36 = vpop.permute.xlu0 %689 }
 0xb76   :  { %vm691_vm13 = vcmp.eq.s32.totalorder %v690_v36, 1 }
 0xb77   :  { %v692_v40 = vsel %vm691_vm13, %v2353_v34, %v2348_v33 }
 0xb78   :  { %v693_v41 = vadd.f32 %v692_v40, %v2544_v37 }
 0xb7a   :  { %1989 = vtanh.f32 %v693_v41 }
 0xb80   :  { %v2549_v43 = vpop.eup %1989 }
 0xb81   :  { %3207 = vst [vmem:[#allocation10_spill] sm:$0xff] %v2549_v43  ;;  %1855 = vmatmul.msk.f32.vlgmr.msrb.gmra.mxu3 %vm52_vm0, %v2549_v43 }
 0xb82   :  { %1859 = vmatpush.msk.msrb.mxu3 %vm56_vm1, %v804_v60 }
 0xb89   :  { %1857 = vmatmul.msk.f32.vlgmr.msra.gmra.mxu3 %vm52_vm0, %v2549_v43 }
 0xb8a   :  { %861 = vmatpush.msra.mxu3 %v2166_v1 }
 0xb8c   :  { %862 = vmatpush.msra.mxu3 %v2178_v3 }
 0xb8e   :  { %863 = vmatpush.msra.mxu3 %v2185_v4 }
 0xb90   :  { %864 = vmatpush.msra.mxu3 %v2191_v5 }
 0xb92   :  { %865 = vmatpush.msra.mxu3 %v2197_v6 }
 0xb94   :  { %866 = vmatpush.msra.mxu3 %v2203_v8 }
 0xb96   :  { %867 = vmatpush.msra.mxu3 %v2212_v9 }
 0xb98   :  { %868 = vmatpush.msra.mxu3 %v2218_v10 }
 0xb9a   :  { %869 = vmatpush.msra.mxu3 %v2224_v11 }
 0xb9c   :  { %870 = vmatpush.msra.mxu3 %v2230_v12 }
 0xb9e   :  { %871 = vmatpush.msra.mxu3 %v2236_v13 }
 0xba0   :  { %872 = vmatpush.msra.mxu3 %v2242_v14 }
 0xba2   :  { %873 = vmatpush.msra.mxu3 %v2248_v15 }
 0xba4   :  { %874 = vmatpush.msra.mxu3 %v2255_v16 }
 0xba6   :  { %875 = vmatpush.msra.mxu3 %v2261_v17 }
 0xba8   :  { %876 = vmatpush.msra.mxu3 %v2267_v18 }
 0xc04   :  { %v722_v46 = vpop.f32.mrf.mxu3 }
 0xc05   :  { %v751_v47 = vadd.f32 %v2285_v19, %v722_v46 }
 0xc07   :  { %v752_v48 = vmax.f32 %v751_v47, 0.0 }
 0xc09   :  { %769 = vmatmul.f32.vlgmr.msra.gmra.mxu2 %v752_v48  ;;  %v912_v48 = vld.sshfl [vmem:[#allocation1] sm:$0xff pattern:$0x75316420] }
 0xc0a   :  { %1864 = vmatpush.msk.msra.mxu0 %vm56_vm1, %v912_v48 }
 0xc0c   :  { %v2586_v7 = vpop.f32.mrf.mxu3 }
 0xc8c   :  { %v770_v52 = vpop.f32.mrf.mxu2 }
 0xc8d   :  { %v2557_v54 = vadd.f32 %v2315_v24, %v770_v52  ;;  %v913_v52 = vld.sshfl [vmem:[#allocation1 + $0x8] sm:$0xff pattern:$0x75316420] }
 0xc8e   :  { %1866 = vmatpush.msk.msra.mxu1 %vm56_vm1, %v913_v52  ;;  %1019 = vst [vmem:[#allocation1] ss:$2 sm:$0xff] %v2161_v0 }
 0xc8f   :  { %784 = vrot.lane.b32.xlu1 %v2557_v54, %s2057_s9 }
 0xc95   :  { %v1020_v52 = vld.sshfl [vmem:[#allocation1] sm:$0xff pattern:$0x75316420] }
 0xc96   :  { %1869 = vmatpush.msk.msrb.mxu1 %vm56_vm1, %v1020_v52 }
 0xd01   :  { %v2561_v55 = vpop.permute.xlu1 %784 }
 0xd02   :  { %vm787_vm14 = vcmp.gt.f32.partialorder %v2557_v54, %v2561_v55 }
 0xd03   :  { %v788_v56 = vsel %vm787_vm14, 1, %v3181_v29 }
 0xd04   :  { %797 = vperm.xlu2 %1974, %v788_v56  }
 0xd5e   :  { %v798_v63 = vpop.permute.xlu2 %797 }
 0xd5f   :  { %vm799_vm15 = vcmp.eq.s32.totalorder %v798_v63, 1 }
 0xd60   :  { %v800_v20 = vsel %vm799_vm15, %v2353_v34, %v2348_v33 }
 0xd61   :  { %v801_v22 = vadd.f32 %v800_v20, %v2586_v7 }
 0xd63   :  { %1991 = vtanh.f32 %v801_v22 }
 0xd69   :  { %v2593_v27 = vpop.eup %1991 }
 0xd6a   :  { %1860 = vmatmul.msk.f32.vlgmr.msrb.gmra.mxu3 %vm52_vm0, %v2593_v27  ;;  %1862 = vmatmul.msk.f32.vlgmr.msrb.gmra.mxu0 %vm52_vm0, %v2593_v27 }
 0xd6b   :  { %969 = vmatpush.msrb.mxu0 %v2166_v1 }
 0xd6d   :  { %970 = vmatpush.msrb.mxu0 %v2178_v3 }
 0xd6f   :  { %971 = vmatpush.msrb.mxu0 %v2185_v4 }
 0xd71   :  { %972 = vmatpush.msrb.mxu0 %v2191_v5 }
 0xd73   :  { %973 = vmatpush.msrb.mxu0 %v2197_v6 }
 0xd75   :  { %974 = vmatpush.msrb.mxu0 %v2203_v8 }
 0xd77   :  { %975 = vmatpush.msrb.mxu0 %v2212_v9 }
 0xd79   :  { %976 = vmatpush.msrb.mxu0 %v2218_v10 }
 0xd7b   :  { %977 = vmatpush.msrb.mxu0 %v2224_v11 }
 0xd7d   :  { %978 = vmatpush.msrb.mxu0 %v2230_v12 }
 0xd7f   :  { %979 = vmatpush.msrb.mxu0 %v2236_v13 }
 0xd81   :  { %980 = vmatpush.msrb.mxu0 %v2242_v14 }
 0xd83   :  { %981 = vmatpush.msrb.mxu0 %v2248_v15 }
 0xd85   :  { %982 = vmatpush.msrb.mxu0 %v2255_v16 }
 0xd87   :  { %983 = vmatpush.msrb.mxu0 %v2261_v17 }
 0xd89   :  { %984 = vmatpush.msrb.mxu0 %v2267_v18 }
 0xde7   :  { %v2630_v60 = vpop.f32.mrf.mxu0 }
 0xde8   :  { %3209 = vst [vmem:[#allocation12_spill] sm:$0xff] %v2630_v60 }
 0xded   :  { %v830_v32 = vpop.f32.mrf.mxu3 }
 0xdee   :  { %v859_v35 = vadd.f32 %v2285_v19, %v830_v32 }
 0xdf0   :  { %v860_v36 = vmax.f32 %v859_v35, 0.0 }
 0xdf2   :  { %877 = vmatmul.f32.vlgmr.msra.gmra.mxu3 %v860_v36 }
 0xe75   :  { %v878_v40 = vpop.f32.mrf.mxu3 }
 0xe76   :  { %v2601_v41 = vadd.f32 %v2315_v24, %v878_v40 }
 0xe78   :  { %892 = vrot.lane.b32.xlu0 %v2601_v41, %s2057_s9 }
 0xeea   :  { %v2605_v46 = vpop.permute.xlu0 %892 }
 0xeeb   :  { %3208 = vst [vmem:[#allocation11_spill] sm:$0xff] %v2605_v46  ;;  %vm895_vm3 = vcmp.gt.f32.partialorder %v2601_v41, %v2605_v46 }
 0xeec   :  { %v896_v47 = vsel %vm895_vm3, 1, %v3181_v29 }
 0xeed   :  { %905 = vperm.xlu1 %1973, %v896_v47  }
 0xf5f   :  { %v906_v56 = vpop.permute.xlu1 %905 }
 0xf60   :  { %vm907_vm5 = vcmp.eq.s32.totalorder %v906_v56, 1  ;;  %v1021_v56 = vld.sshfl [vmem:[#allocation1 + $0x8] sm:$0xff pattern:$0x75316420] }
 0xf61   :  { %v908_v61 = vsel %vm907_vm5, %v2353_v34, %v2348_v33  ;;  %1871 = vmatpush.msk.msrb.mxu2 %vm56_vm1, %v1021_v56  ;;  %1127 = vst [vmem:[#allocation1] ss:$2 sm:$0xff] %v2161_v0 }
 0xf62   :  { %v909_v63 = vadd.f32 %v908_v61, %v2630_v60  ;;  %v3213_v60 = vmov 0  }
 0xf64   :  { %1993 = vtanh.f32 %v909_v63 }
 0xf6a   :  { %v2637_v20 = vpop.eup %1993 }
 0xf6b   :  { %1865 = vmatmul.msk.f32.vlgmr.msra.gmra.mxu0 %vm52_vm0, %v2637_v20  ;;  %1867 = vmatmul.msk.f32.vlgmr.msra.gmra.mxu1 %vm52_vm0, %v2637_v20 }
 0xf6c   :  { %1077 = vmatpush.msra.mxu1 %v2166_v1 }
 0xf6e   :  { %1078 = vmatpush.msra.mxu1 %v2178_v3 }
 0xf70   :  { %1079 = vmatpush.msra.mxu1 %v2185_v4 }
 0xf72   :  { %1080 = vmatpush.msra.mxu1 %v2191_v5 }
 0xf74   :  { %1081 = vmatpush.msra.mxu1 %v2197_v6 }
 0xf76   :  { %1082 = vmatpush.msra.mxu1 %v2203_v8 }
 0xf78   :  { %1083 = vmatpush.msra.mxu1 %v2212_v9 }
 0xf7a   :  { %1084 = vmatpush.msra.mxu1 %v2218_v10 }
 0xf7c   :  { %1085 = vmatpush.msra.mxu1 %v2224_v11 }
 0xf7e   :  { %1086 = vmatpush.msra.mxu1 %v2230_v12 }
 0xf80   :  { %1087 = vmatpush.msra.mxu1 %v2236_v13 }
 0xf82   :  { %1088 = vmatpush.msra.mxu1 %v2242_v14 }
 0xf84   :  { %1089 = vmatpush.msra.mxu1 %v2248_v15 }
 0xf86   :  { %1090 = vmatpush.msra.mxu1 %v2255_v16 }
 0xf88   :  { %1091 = vmatpush.msra.mxu1 %v2261_v17 }
 0xf8a   :  { %1092 = vmatpush.msra.mxu1 %v2267_v18 }
 0xfe8   :  { %v938_v22 = vpop.f32.mrf.mxu0  ;;  %v2674_v63 = vpop.f32.mrf.mxu1 }
 0xfe9   :  { %v967_v32 = vadd.f32 %v2285_v19, %v938_v22 }
 0xfeb   :  { %v968_v35 = vmax.f32 %v967_v32, 0.0 }
 0xfed   :  { %985 = vmatmul.f32.vlgmr.msrb.gmra.mxu0 %v968_v35 }
0x106a   :  { %v986_v36 = vpop.f32.mrf.mxu0 }
0x106b   :  { %v2645_v40 = vadd.f32 %v2315_v24, %v986_v36 }
0x106d   :  { %1000 = vrot.lane.b32.xlu2 %v2645_v40, %s2057_s9 }
0x10c7   :  { %v2649_v47 = vpop.permute.xlu2 %1000 }
0x10c8   :  { %vm1003_vm7 = vcmp.gt.f32.partialorder %v2645_v40, %v2649_v47 }
0x10c9   :  { %v1004_v48 = vsel %vm1003_vm7, 1, %v3181_v29 }
0x10ca   :  { %1013 = vperm.xlu0 %1972, %v1004_v48  }
0x113c   :  { %v1014_v61 = vpop.permute.xlu0 %1013 }
0x113d   :  { %vm1015_vm9 = vcmp.eq.s32.totalorder %v1014_v61, 1 }
0x113e   :  { %v1016_v22 = vsel %vm1015_vm9, %v2353_v34, %v2348_v33 }
0x113f   :  { %v1017_v32 = vadd.f32 %v1016_v22, %v2674_v63 }
0x1141   :  { %1995 = vtanh.f32 %v1017_v32 }
0x1147   :  { %v2681_v35 = vpop.eup %1995 }
0x1148   :  { %3210 = vst [vmem:[#allocation13_spill] sm:$0xff] %v2681_v35  ;;  %1870 = vmatmul.msk.f32.vlgmr.msrb.gmra.mxu1 %vm52_vm0, %v2681_v35  ;;  %1872 = vmatmul.msk.f32.vlgmr.msrb.gmra.mxu2 %vm52_vm0, %v2681_v35 }
0x11c5   :  { %v1046_v36 = vpop.f32.mrf.mxu1 }
0x11c6   :  { %v1075_v48 = vadd.f32 %v2285_v19, %v1046_v36  ;;  %v1128_v36 = vld.sshfl [vmem:[#allocation1] sm:$0xff pattern:$0x75316420] }
0x11c7   :  { %1874 = vmatpush.msk.msra.mxu2 %vm56_vm1, %v1128_v36 }
0x11c8   :  { %v1076_v52 = vmax.f32 %v1075_v48, 0.0  ;;  %v1129_v48 = vld.sshfl [vmem:[#allocation1 + $0x8] sm:$0xff pattern:$0x75316420] }
0x11c9   :  { %1876 = vmatpush.msk.msrb.mxu3 %vm56_vm1, %v1129_v48  ;;  %1235 = vst [vmem:[#allocation1] ss:$2 sm:$0xff] %v2161_v0  ;;  %1185 = vmatpush.msrb.mxu2 %v2166_v1 }
0x11ca   :  { %1093 = vmatmul.f32.vlgmr.msra.gmra.mxu1 %v1076_v52 }
0x11cb   :  { %1186 = vmatpush.msrb.mxu2 %v2178_v3 }
0x11cd   :  { %1187 = vmatpush.msrb.mxu2 %v2185_v4 }
0x11cf   :  { %1188 = vmatpush.msrb.mxu2 %v2191_v5 }
0x11d1   :  { %1189 = vmatpush.msrb.mxu2 %v2197_v6 }
0x11d3   :  { %1190 = vmatpush.msrb.mxu2 %v2203_v8 }
0x11d5   :  { %1191 = vmatpush.msrb.mxu2 %v2212_v9 }
0x11d7   :  { %1192 = vmatpush.msrb.mxu2 %v2218_v10 }
0x11d9   :  { %1193 = vmatpush.msrb.mxu2 %v2224_v11 }
0x11db   :  { %1194 = vmatpush.msrb.mxu2 %v2230_v12 }
0x11dd   :  { %1195 = vmatpush.msrb.mxu2 %v2236_v13 }
0x11df   :  { %1196 = vmatpush.msrb.mxu2 %v2242_v14 }
0x11e1   :  { %1197 = vmatpush.msrb.mxu2 %v2248_v15 }
0x11e3   :  { %1198 = vmatpush.msrb.mxu2 %v2255_v16 }
0x11e5   :  { %1199 = vmatpush.msrb.mxu2 %v2261_v17 }
0x11e7   :  { %1200 = vmatpush.msrb.mxu2 %v2267_v18 }
0x1247   :  { %v1094_v56 = vpop.f32.mrf.mxu1 }
0x1248   :  { %v2689_v61 = vadd.f32 %v2315_v24, %v1094_v56  ;;  %v2718_v56 = vpop.f32.mrf.mxu2 }
0x124a   :  { %1108 = vrot.lane.b32.xlu1 %v2689_v61, %s2057_s9 }
0x12bc   :  { %v2693_v22 = vpop.permute.xlu1 %1108 }
0x12bd   :  { %vm1111_vm11 = vcmp.gt.f32.partialorder %v2689_v61, %v2693_v22  ;;  %v3226_v22 = vld [vmem:[#allocation7_spill] sm:$0xff] }
0x12be   :  { %v1112_v32 = vsel %vm1111_vm11, 1, %v3181_v29 }
0x12bf   :  { %1121 = vperm.xlu2 %1974, %v1112_v32  }
0x1319   :  { %v1122_v52 = vpop.permute.xlu2 %1121 }
0x131a   :  { %vm1123_vm13 = vcmp.eq.s32.totalorder %v1122_v52, 1 }
0x131b   :  { %v1124_v32 = vsel %vm1123_vm13, %v2353_v34, %v2348_v33 }
0x131c   :  { %v1125_v36 = vadd.f32 %v1124_v32, %v2718_v56 }
0x131e   :  { %1997 = vtanh.f32 %v1125_v36 }
0x1324   :  { %v2725_v48 = vpop.eup %1997 }
0x1325   :  { %1875 = vmatmul.msk.f32.vlgmr.msra.gmra.mxu2 %vm52_vm0, %v2725_v48  ;;  %1877 = vmatmul.msk.f32.vlgmr.msrb.gmra.mxu3 %vm52_vm0, %v2725_v48 }
0x13a8   :  { %v1154_v52 = vpop.f32.mrf.mxu2 }
0x13a9   :  { %v1183_v29 = vadd.f32 %v2285_v19, %v1154_v52 }
0x13ab   :  { %v1184_v35 = vmax.f32 %v1183_v29, 0.0  ;;  %v1236_v29 = vld.sshfl [vmem:[#allocation1] sm:$0xff pattern:$0x75316420] }
0x13ac   :  { %1879 = vmatpush.msk.msra.mxu3 %vm56_vm1, %v1236_v29 }
0x13ad   :  { %1201 = vmatmul.f32.vlgmr.msrb.gmra.mxu2 %v1184_v35  ;;  %v1237_v35 = vld.sshfl [vmem:[#allocation1 + $0x8] sm:$0xff pattern:$0x75316420] }
0x13ae   :  { %1881 = vmatpush.msk.msra.mxu0 %vm56_vm1, %v1237_v35  ;;  %1343 = vst [vmem:[#allocation1] ss:$2 sm:$0xff] %v2161_v0  ;;  %1293 = vmatpush.msrb.mxu3 %v2166_v1 }
0x13b0   :  { %1294 = vmatpush.msrb.mxu3 %v2178_v3  ;;  %v2762_v3 = vpop.f32.mrf.mxu3 }
0x13b1   :  { %3214 = vst [vmem:[#allocation16_spill] sm:$0xff] %v2762_v3 }
0x13b2   :  { %1295 = vmatpush.msrb.mxu3 %v2185_v4 }
0x13b4   :  { %1296 = vmatpush.msrb.mxu3 %v2191_v5 }
0x13b6   :  { %1297 = vmatpush.msrb.mxu3 %v2197_v6 }
0x13b8   :  { %1298 = vmatpush.msrb.mxu3 %v2203_v8 }
0x13ba   :  { %1299 = vmatpush.msrb.mxu3 %v2212_v9 }
0x13bc   :  { %1300 = vmatpush.msrb.mxu3 %v2218_v10 }
0x13be   :  { %1301 = vmatpush.msrb.mxu3 %v2224_v11 }
0x13c0   :  { %1302 = vmatpush.msrb.mxu3 %v2230_v12 }
0x13c2   :  { %1303 = vmatpush.msrb.mxu3 %v2236_v13 }
0x13c4   :  { %1304 = vmatpush.msrb.mxu3 %v2242_v14 }
0x13c6   :  { %1305 = vmatpush.msrb.mxu3 %v2248_v15 }
0x13c8   :  { %1306 = vmatpush.msrb.mxu3 %v2255_v16 }
0x13ca   :  { %1307 = vmatpush.msrb.mxu3 %v2261_v17 }
0x13cc   :  { %1308 = vmatpush.msrb.mxu3 %v2267_v18 }
0x1430   :  { %v1202_v46 = vpop.f32.mrf.mxu2 }
0x1431   :  { %v2733_v32 = vadd.f32 %v2315_v24, %v1202_v46 }
0x1433   :  { %3211 = vst [vmem:[#allocation14_spill] sm:$0xff] %v2733_v32  ;;  %1216 = vrot.lane.b32.xlu0 %v2733_v32, %s2057_s9 }
0x14a5   :  { %v2737_v36 = vpop.permute.xlu0 %1216 }
0x14a6   :  { %3212 = vst [vmem:[#allocation15_spill] sm:$0xff] %v2737_v36  ;;  %vm1219_vm15 = vcmp.gt.f32.partialorder %v2733_v32, %v2737_v36 }
0x14a7   :  { %v1220_v43 = vsel %vm1219_vm15, 1, %v3213_v60 }
0x14a8   :  { %1229 = vperm.xlu1 %1973, %v1220_v43  }
0x151a   :  { %v1230_v1 = vpop.permute.xlu1 %1229 }
0x151b   :  { %vm1231_vm5 = vcmp.eq.s32.totalorder %v1230_v1, 1 }
0x151c   :  { %v1232_v4 = vsel %vm1231_vm5, %v2353_v34, %v2348_v33 }
0x151d   :  { %v1233_v5 = vadd.f32 %v1232_v4, %v2762_v3 }
0x151f   :  { %1999 = vtanh.f32 %v1233_v5  ;;  %v1344_v5 = vld.sshfl [vmem:[#allocation1] sm:$0xff pattern:$0x75316420] }
0x1520   :  { %1884 = vmatpush.msk.msrb.mxu0 %vm56_vm1, %v1344_v5  ;;  %v2819_v5 = vld [vmem:[%s3177_s3 + $0x58] sm:$0xff] }
0x1525   :  { %v2769_v6 = vpop.eup %1999 }
0x1526   :  { %3215 = vst [vmem:[#allocation17_spill] sm:$0xff] %v2769_v6  ;;  %1880 = vmatmul.msk.f32.vlgmr.msra.gmra.mxu3 %vm52_vm0, %v2769_v6  ;;  %1882 = vmatmul.msk.f32.vlgmr.msra.gmra.mxu0 %vm52_vm0, %v2769_v6 }
0x15a3   :  { %v2831_v36 = vpop.f32.mrf.mxu0 }
0x15a9   :  { %v1262_v43 = vpop.f32.mrf.mxu3 }
0x15aa   :  { %v1291_v46 = vadd.f32 %v2285_v19, %v1262_v43  ;;  %v1345_v43 = vld.sshfl [vmem:[#allocation1 + $0x8] sm:$0xff pattern:$0x75316420] }
0x15ab   :  { %1886 = vmatpush.msk.msrb.mxu1 %vm56_vm1, %v1345_v43  ;;  %1451 = vst [vmem:[#allocation1] ss:$2 sm:$0xff] %v2161_v0 }
0x15ac   :  { %v1292_v52 = vmax.f32 %v1291_v46, 0.0  ;;  %v2795_v46 = vld [vmem:[%s3177_s3 + $0x78] sm:$0xff] }
0x15ad   :  { %1401 = vmatpush.msra.mxu0 %v2795_v46 }
0x15ae   :  { %1309 = vmatmul.f32.vlgmr.msrb.gmra.mxu3 %v1292_v52  ;;  %v2801_v52 = vld [vmem:[%s3177_s3 + $0x70] sm:$0xff] }
0x15af   :  { %1402 = vmatpush.msra.mxu0 %v2801_v52 }
0x1631   :  { %v1310_v29 = vpop.f32.mrf.mxu3 }
0x1632   :  { %v2777_v35 = vadd.f32 %v2315_v24, %v1310_v29  ;;  %v2807_v29 = vld [vmem:[%s3177_s3 + $0x68] sm:$0xff] }
0x1633   :  { %1403 = vmatpush.msra.mxu0 %v2807_v29 }
0x1634   :  { %1324 = vrot.lane.b32.xlu2 %v2777_v35, %s2057_s9 }
0x168e   :  { %v2781_v1 = vpop.permute.xlu2 %1324 }
0x168f   :  { %vm1327_vm9 = vcmp.gt.f32.partialorder %v2777_v35, %v2781_v1 }
0x1690   :  { %v1328_v4 = vsel %vm1327_vm9, 1, %v3213_v60 }
0x1691   :  { %1337 = vperm.xlu0 %1972, %v1328_v4   ;;  %v2813_v4 = vld [vmem:[%s3177_s3 + $0x60] sm:$0xff] }
0x1692   :  { %1404 = vmatpush.msra.mxu0 %v2813_v4 }
0x1694   :  { %1405 = vmatpush.msra.mxu0 %v2819_v5 }
0x1696   :  { %1406 = vmatpush.msra.mxu0 %v2203_v8 }
0x1698   :  { %1407 = vmatpush.msra.mxu0 %v2212_v9 }
0x169a   :  { %1408 = vmatpush.msra.mxu0 %v2218_v10 }
0x169c   :  { %1409 = vmatpush.msra.mxu0 %v2224_v11 }
0x169e   :  { %1410 = vmatpush.msra.mxu0 %v2230_v12 }
0x16a0   :  { %1411 = vmatpush.msra.mxu0 %v2236_v13 }
0x16a2   :  { %1412 = vmatpush.msra.mxu0 %v2242_v14 }
0x16a4   :  { %1413 = vmatpush.msra.mxu0 %v2248_v15 }
0x16a6   :  { %1414 = vmatpush.msra.mxu0 %v2255_v16 }
0x16a8   :  { %1415 = vmatpush.msra.mxu0 %v2261_v17 }
0x16aa   :  { %1416 = vmatpush.msra.mxu0 %v2267_v18  ;;  %v1452_v18 = vld.sshfl [vmem:[#allocation1] sm:$0xff pattern:$0x75316420] }
0x16ab   :  { %1889 = vmatpush.msk.msra.mxu1 %vm56_vm1, %v1452_v18 }
0x1703   :  { %v1338_v43 = vpop.permute.xlu0 %1337 }
0x1704   :  { %vm1339_vm13 = vcmp.eq.s32.totalorder %v1338_v43, 1  ;;  %v2869_v43 = vld [vmem:[%s3177_s3 + $0x50] sm:$0xff] }
0x1705   :  { %v1340_v8 = vsel %vm1339_vm13, %v2353_v34, %v2348_v33 }
0x1706   :  { %v1341_v9 = vadd.f32 %v1340_v8, %v2831_v36  ;;  %v2875_v8 = vld [vmem:[%s3177_s3 + $0x48] sm:$0xff] }
0x1708   :  { %2001 = vtanh.f32 %v1341_v9  ;;  %v2881_v9 = vld [vmem:[%s3177_s3 + $0x40] sm:$0xff] }
0x170e   :  { %v2838_v10 = vpop.eup %2001 }
0x170f   :  { %3216 = vst [vmem:[#allocation18_spill] sm:$0xff] %v2838_v10  ;;  %1885 = vmatmul.msk.f32.vlgmr.msrb.gmra.mxu0 %vm52_vm0, %v2838_v10  ;;  %1887 = vmatmul.msk.f32.vlgmr.msrb.gmra.mxu1 %vm52_vm0, %v2838_v10 }
0x1710   :  { %1509 = vmatpush.msrb.mxu1 %v2795_v46 }
0x1712   :  { %1510 = vmatpush.msrb.mxu1 %v2801_v52 }
0x1714   :  { %1511 = vmatpush.msrb.mxu1 %v2807_v29 }
0x1716   :  { %1512 = vmatpush.msrb.mxu1 %v2813_v4 }
0x1718   :  { %1513 = vmatpush.msrb.mxu1 %v2819_v5 }
0x171a   :  { %1514 = vmatpush.msrb.mxu1 %v2869_v43 }
0x171c   :  { %1515 = vmatpush.msrb.mxu1 %v2875_v8 }
0x171e   :  { %1516 = vmatpush.msrb.mxu1 %v2881_v9 }
0x178c   :  { %v1370_v11 = vpop.f32.mrf.mxu0  ;;  %v2920_v10 = vpop.f32.mrf.mxu1 }
0x178d   :  { %v1399_v12 = vadd.f32 %v2285_v19, %v1370_v11  ;;  %v1453_v19 = vld.sshfl [vmem:[#allocation1 + $0x8] sm:$0xff pattern:$0x75316420]  ;;  %v2887_v11 = vld [vmem:[%s3177_s3 + $0x38] sm:$0xff]  ;;  %3218 = vst [vmem:[#allocation20_spill] sm:$0xff] %v2920_v10 }
0x178e   :  { %1891 = vmatpush.msk.msra.mxu2 %vm56_vm1, %v1453_v19  ;;  %1559 = vst [vmem:[#allocation1] ss:$2 sm:$0xff] %v2161_v0  ;;  %1517 = vmatpush.msrb.mxu1 %v2887_v11  ;;  %v2917_v19 = vld [vmem:[%s3177_s3 + $0x10] sm:$0xff] }
0x178f   :  { %v1400_v13 = vmax.f32 %v1399_v12, 0.0  ;;  %v2893_v12 = vld [vmem:[%s3177_s3 + $0x30] sm:$0xff] }
0x1790   :  { %1518 = vmatpush.msrb.mxu1 %v2893_v12 }
0x1791   :  { %1417 = vmatmul.f32.vlgmr.msra.gmra.mxu0 %v1400_v13  ;;  %v2899_v13 = vld [vmem:[%s3177_s3 + $0x28] sm:$0xff] }
0x1792   :  { %1519 = vmatpush.msrb.mxu1 %v2899_v13 }
0x1794   :  { %v3223_v55 = vld [vmem:[#allocation20_spill] sm:$0xff] }
0x180e   :  { %v1418_v14 = vpop.f32.mrf.mxu0 }
0x180f   :  { %v2846_v15 = vadd.f32 %v2315_v24, %v1418_v14  ;;  %v2905_v14 = vld [vmem:[%s3177_s3 + $0x20] sm:$0xff] }
0x1810   :  { %1520 = vmatpush.msrb.mxu1 %v2905_v14 }
0x1811   :  { %1432 = vrot.lane.b32.xlu1 %v2846_v15, %s2057_s9 }
0x1883   :  { %v2850_v16 = vpop.permute.xlu1 %1432 }
0x1884   :  { %3217 = vst [vmem:[#allocation19_spill] sm:$0xff] %v2850_v16  ;;  %vm1435_vm5 = vcmp.gt.f32.partialorder %v2846_v15, %v2850_v16 }
0x1885   :  { %v1436_v17 = vsel %vm1435_vm5, 1, %v3213_v60 }
0x1886   :  { %1445 = vperm.xlu2 %1974, %v1436_v17   ;;  %v2911_v17 = vld [vmem:[%s3177_s3 + $0x18] sm:$0xff] }
0x1887   :  { %1521 = vmatpush.msrb.mxu1 %v2911_v17 }
0x1889   :  { %1522 = vmatpush.msrb.mxu1 %v2917_v19 }
0x188b   :  { %1523 = vmatpush.msrb.mxu1 %v2928_v57 }
0x18e0   :  { %v1446_v18 = vpop.permute.xlu2 %1445 }
0x18e1   :  { %vm1447_vm13 = vcmp.eq.s32.totalorder %v1446_v18, 1  ;;  %v2934_v18 = vld [vmem:[%s3177_s3] sm:$0xff]  ;;  %s2086_s3 = smov 72  }
0x18e2   :  { %v1448_v3 = vsel %vm1447_vm13, %v2353_v34, %v2348_v33  ;;  %1524 = vmatpush.msrb.mxu1 %v2934_v18 }
0x18e3   :  { %v1449_v51 = vadd.f32 %v1448_v3, %v2920_v10 }
0x18e5   :  { %2003 = vtanh.f32 %v1449_v51  ;;  %v2946_v51 = vld [vmem:[%s3176_s2] ss:$0 sm:$0xff]  ;;  %s2084_s2 = smov 8  }
0x18eb   :  { %v2937_v21 = vpop.eup %2003 }
0x18ec   :  { %1890 = vmatmul.msk.f32.vlgmr.msra.gmra.mxu1 %vm52_vm0, %v2937_v21  ;;  %1892 = vmatmul.msk.f32.vlgmr.msra.gmra.mxu2 %vm52_vm0, %v2937_v21 }
0x1969   :  { %v1478_v3 = vpop.f32.mrf.mxu1 }
0x196a   :  { %v1507_v16 = vadd.f32 %v2946_v51, %v1478_v3 }
0x196c   :  { %v1508_v45 = vmax.f32 %v1507_v16, 0.0  ;;  %v1560_v16 = vld.sshfl [vmem:[#allocation1] sm:$0xff pattern:$0x75316420] }
0x196d   :  { %1894 = vmatpush.msk.msrb.mxu2 %vm56_vm1, %v1560_v16 }
0x196e   :  { %1525 = vmatmul.f32.vlgmr.msrb.gmra.mxu1 %v1508_v45  ;;  %v1561_v45 = vld.sshfl [vmem:[#allocation1 + $0x8] sm:$0xff pattern:$0x75316420] }
0x196f   :  { %1896 = vmatpush.msk.msra.mxu3 %vm56_vm1, %v1561_v45  ;;  %1667 = vst [vmem:[#allocation1] ss:$2 sm:$0xff] %v2161_v0  ;;  %1617 = vmatpush.msra.mxu2 %v2795_v46 }
0x1971   :  { %1618 = vmatpush.msra.mxu2 %v2801_v52 }
0x1973   :  { %1619 = vmatpush.msra.mxu2 %v2807_v29 }
0x1975   :  { %1620 = vmatpush.msra.mxu2 %v2813_v4 }
0x1976   :  { %v1668_v59 = vld.sshfl [vmem:[#allocation1] sm:$0xff pattern:$0x75316420] }
0x1977   :  { %1621 = vmatpush.msra.mxu2 %v2819_v5  ;;  %1899 = vmatpush.msk.msrb.mxu3 %vm56_vm1, %v1668_v59 }
0x1979   :  { %1622 = vmatpush.msra.mxu2 %v2869_v43 }
0x197b   :  { %1623 = vmatpush.msra.mxu2 %v2875_v8 }
0x197d   :  { %1624 = vmatpush.msra.mxu2 %v2881_v9 }
0x197f   :  { %1625 = vmatpush.msra.mxu2 %v2887_v11 }
0x1981   :  { %1626 = vmatpush.msra.mxu2 %v2893_v12 }
0x1983   :  { %1627 = vmatpush.msra.mxu2 %v2899_v13 }
0x1985   :  { %1628 = vmatpush.msra.mxu2 %v2905_v14 }
0x1987   :  { %1629 = vmatpush.msra.mxu2 %v2911_v17 }
0x1989   :  { %1630 = vmatpush.msra.mxu2 %v2917_v19 }
0x198b   :  { %1631 = vmatpush.msra.mxu2 %v2928_v57 }
0x198d   :  { %1632 = vmatpush.msra.mxu2 %v2934_v18 }
0x19eb   :  { %v1526_v10 = vpop.f32.mrf.mxu1 }
0x19ec   :  { %v2950_v50 = vadd.f32 %v2315_v24, %v1526_v10 }
0x19ee   :  { %1540 = vrot.lane.b32.xlu0 %v2950_v50, %s2057_s9 }
0x1a60   :  { %v2954_v6 = vpop.permute.xlu0 %1540 }
0x1a61   :  { %3219 = vst [vmem:[#allocation21_spill] sm:$0xff] %v2954_v6  ;;  %vm3200_vm13 = vcmp.gt.f32.partialorder %v2950_v50, %v2954_v6 }
0x1a62   :  { %v1544_v32 = vsel %vm3200_vm13, 1, %v3213_v60 }
0x1a63   :  { %1553 = vperm.xlu1 %1973, %v1544_v32   ;;  %v2979_v32 = vpop.f32.mrf.mxu2 }
0x1ad5   :  { %v1554_v24 = vpop.permute.xlu1 %1553 }
0x1ad6   :  { %vm1555_vm13 = vcmp.eq.s32.totalorder %v1554_v24, 1 }
0x1ad7   :  { %v1556_v10 = vsel %vm1555_vm13, %v2353_v34, %v2348_v33  ;;  %v2996_v34 = vld [vmem:[%s3178_s4] ss:$0 sm:$0xff]  ;;  %s2061_s4 = smov 4  }
0x1ad8   :  { %v1557_v3 = vadd.f32 %v1556_v10, %v2979_v32 }
0x1ada   :  { %2005 = vtanh.f32 %v1557_v3 }
0x1ae0   :  { %v2986_v16 = vpop.eup %2005 }
0x1ae1   :  { %1895 = vmatmul.msk.f32.vlgmr.msrb.gmra.mxu2 %vm52_vm0, %v2986_v16  ;;  %1897 = vmatmul.msk.f32.vlgmr.msra.gmra.mxu3 %vm52_vm0, %v2986_v16 }
0x1ae2   :  { %1725 = vmatpush.msra.mxu3 %v2795_v46 }
0x1ae4   :  { %1726 = vmatpush.msra.mxu3 %v2801_v52 }
0x1ae6   :  { %1727 = vmatpush.msra.mxu3 %v2807_v29 }
0x1ae8   :  { %1728 = vmatpush.msra.mxu3 %v2813_v4 }
0x1aea   :  { %1729 = vmatpush.msra.mxu3 %v2819_v5 }
0x1aec   :  { %1730 = vmatpush.msra.mxu3 %v2869_v43 }
0x1aee   :  { %1731 = vmatpush.msra.mxu3 %v2875_v8 }
0x1af0   :  { %1732 = vmatpush.msra.mxu3 %v2881_v9 }
0x1af2   :  { %1733 = vmatpush.msra.mxu3 %v2887_v11 }
0x1af4   :  { %1734 = vmatpush.msra.mxu3 %v2893_v12 }
0x1af6   :  { %1735 = vmatpush.msra.mxu3 %v2899_v13  ;;  %v3229_v13 = vld [vmem:[#allocation10_spill] sm:$0xff] }
0x1af8   :  { %1736 = vmatpush.msra.mxu3 %v2905_v14  ;;  %v3230_v14 = vld [vmem:[#allocation12_spill] sm:$0xff] }
0x1afa   :  { %1737 = vmatpush.msra.mxu3 %v2911_v17 }
0x1afc   :  { %1738 = vmatpush.msra.mxu3 %v2917_v19 }
0x1afe   :  { %1739 = vmatpush.msra.mxu3 %v2928_v57 }
0x1b00   :  { %1740 = vmatpush.msra.mxu3 %v2934_v18 }
0x1b64   :  { %v1586_v45 = vpop.f32.mrf.mxu2  ;;  %v1606_v25 = vpop.f32.mrf.mxu3 }
0x1b65   :  { %v1615_v24 = vadd.f32 %v2946_v51, %v1586_v45  ;;  %v2063_v45 = vmov 0.0  }
0x1b66   :  { %v1883_v57 = vsel %vm1327_vm9, 1.0, %v2063_v45  ;;  %v1843_v43 = vsel %vm463_vm8, 1.0, %v2063_v45  ;;  %v1873_v28 = vsel %vm1111_vm11, 1.0, %v2063_v45  ;;  %vm146_vm8 = vcmask 925568  }
0x1b67   :  { %v1616_v6 = vmax.f32 %v1615_v24, 0.0  ;;  %v1838_v24 = vsel %vm355_vm6, 1.0, %v2063_v45  ;;  %v1863_v18 = vsel %vm895_vm3, 1.0, %v2063_v45  ;;  %vm254_vm3 = vcmask 933768  }
0x1b68   :  { %vm344_vm11 = vcmask 97344   ;;  %vm362_vm9 = vcmask 941968  }
0x1b69   :  { %1633 = vmatmul.f32.vlgmr.msra.gmra.mxu2 %v1616_v6 }
0x1bec   :  { %v1634_v33 = vpop.f32.mrf.mxu2 }
0x1bed   :  { %v2999_v10 = vadd.f32 %v2996_v34, %v1634_v33 }
0x1bef   :  { %1648 = vrot.lane.b32.xlu2 %v2999_v10, %s2057_s9 }
0x1c49   :  { %v3003_v3 = vpop.permute.xlu2 %1648 }
0x1c4a   :  { %vm1651_vm13 = vcmp.gt.f32.partialorder %v2999_v10, %v3003_v3 }
0x1c4b   :  { %v1652_v6 = vsel %vm1651_vm13, 1, %v3213_v60 }
0x1c4c   :  { %1661 = vperm.xlu0 %1972, %v1652_v6  }
0x1c54   :  { %131 = vrot.lane.b32.xlu0 %v2318_v26, %s2060_s23  ;;  %s2087_s23 = smov 20   ;;  %v1858_v26 = vsel %vm787_vm14, 1.0, %v2063_v45  ;;  %vm242_vm14 = vcmask 556560  }
0x1c5c   :  { %233 = vrot.lane.b32.xlu0 %v2361_v39, %s2061_s4  ;;  %v1853_v39 = vsel %vm679_vm12, 1.0, %v2063_v45  ;;  %vm134_vm12 = vcmask 540160   ;;  %s2088_s4 = smov 97  }
0x1c64   :  { %314 = vrot.lane.b32.xlu0 %v2428_v2, %s2062_s24  ;;  %v1669_v2 = vld.sshfl [vmem:[#allocation1 + $0x8] sm:$0xff pattern:$0x75316420]  ;;  %s2089_s24 = smov 117  }
0x1c65   :  { %1901 = vmatpush.msk.msrb.mxu0 %vm56_vm1, %v1669_v2  ;;  %1775 = vst [vmem:[#allocation1] ss:$2 sm:$0xff] %v2161_v0  ;;  %v3233_v2 = vld [vmem:[#allocation16_spill] sm:$0xff] }
0x1c6c   :  { %359 = vrot.lane.b32.xlu0 %v1838_v24, %s2064_s25  ;;  %s2090_s25 = smov 78   ;;  %v1776_v12 = vld.sshfl [vmem:[#allocation1 + $0x8] sm:$0xff pattern:$0x75316420]  ;;  %v3232_v24 = vld [vmem:[#allocation13_spill] sm:$0xff] }
0x1c6d   :  { %1904 = vmatpush.msk.msra.mxu0 %vm56_vm1, %v1776_v12  ;;  %vm209_vm1 = vcmask 794368  }
0x1c74   :  { %455 = vrot.lane.b32.xlu0 %v2441_v30, %s2065_s26  ;;  %s2091_s26 = smov 32  }
0x1c7c   :  { %557 = vrot.lane.b32.xlu0 %v2477_v42, %s2066_s27  ;;  %v1868_v42 = vsel %vm1003_vm7, 1.0, %v2063_v45  ;;  %s2092_s27 = smov 100   ;;  %vm317_vm7 = vcmask 802568  }
0x1c84   :  { %638 = vrot.lane.b32.xlu0 %v2544_v37, %s2067_s28  ;;  %v3054_v37 = vld [vmem:[%s3179_s5] ss:$0 sm:$0xff]  ;;  %s2093_s28 = smov 120  }
0x1c8c   :  { %683 = vrot.lane.b32.xlu0 %v1853_v39, %s2068_s1  ;;  %s2094_s1 = smov 84  }
0x1c94   :  { %779 = vrot.lane.b32.xlu0 %v2557_v54, %s2069_s29  ;;  %s2095_s29 = smov 44   ;;  %v3222_v54 = vld [vmem:[#allocation6_spill] sm:$0xff] }
0x1c9c   :  { %881 = vrot.lane.b32.xlu0 %v2593_v27, %s2070_s0  ;;  %v3059_v27 = vld [vmem:[%s3179_s5 + $0x1] ss:$0 sm:$0xff]  ;;  %s2076_s5 = smov 122   ;;  %s2096_s0 = smov 92  }
0x1ca4   :  { %962 = vrot.lane.b32.xlu0 %v2674_v63, %s2071_s30  ;;  %s2097_s30 = smov 103  }
0x1cac   :  { %1007 = vrot.lane.b32.xlu0 %v1868_v42, %s2072_s7  ;;  %s2098_s7 = smov 112  }
0x1cb4   :  { %1103 = vrot.lane.b32.xlu0 %v2689_v61, %s2073_s8  ;;  %v1888_v61 = vsel %vm1435_vm5, 1.0, %v2063_v45  ;;  %s2099_s8 = smov 123   ;;  %vm425_vm5 = vcmask 810768  }
0x1cbc   :  { %1205 = vrot.lane.b32.xlu0 %v2725_v48, %s2074_s10  ;;  %s2100_s10 = smov 68  }
0x1cbe   :  { %v1662_v0 = vpop.permute.xlu0 %1661 }
0x1cbf   :  { %vm1663_vm6 = vcmp.eq.s32.totalorder %v1662_v0, 1 }
0x1cc0   :  { %v1664_v47 = vsel %vm1663_vm6, %v3059_v27, %v3054_v37  ;;  %vm458_vm6 = vcmask 589360  }
0x1cc1   :  { %v1665_v63 = vadd.f32 %v1664_v47, %v1606_v25 }
0x1cc3   :  { %2007 = vtanh.f32 %v1665_v63 }
0x1cc4   :  { %1286 = vrot.lane.b32.xlu0 %v2831_v36, %s2075_s15  ;;  %v1898_v36 = vsel %vm1651_vm13, 1.0, %v2063_v45  ;;  %s2105_s15 = smov 106   ;;  %vm452_vm13 = vcmask 130144  }
0x1cc6   :  { %v132_v48 = vpop.permute.xlu0 %131 }
0x1cc7   :  { %135 = vst.msk [vmem:[#allocation2] sm:$0xff] %vm134_vm12, %v132_v48  ;;  %vm470_vm12 = vcmask 950168  }
0x1cc9   :  { %v3066_v46 = vpop.eup %2007 }
0x1cca   :  { %1900 = vmatmul.msk.f32.vlgmr.msrb.gmra.mxu3 %vm52_vm0, %v3066_v46  ;;  %1902 = vmatmul.msk.f32.vlgmr.msrb.gmra.mxu0 %vm52_vm0, %v3066_v46 }
0x1ccc   :  { %1331 = vrot.lane.b32.xlu0 %v1883_v57, %s2076_s5  ;;  %s2106_s5 = smov 115  }
0x1cce   :  { %v234_v11 = vpop.permute.xlu0 %233 }
0x1cd4   :  { %1427 = vrot.lane.b32.xlu0 %v2846_v15, %s2077_s16  ;;  %s2107_s16 = smov 126  }
0x1cd6   :  { %v315_v17 = vpop.permute.xlu0 %314 }
0x1cdc   :  { %1529 = vrot.lane.b32.xlu0 %v2937_v21, %s2078_s17  ;;  %v1828_v21 = vsel %vm139_vm2, 1.0, %v2063_v45  ;;  %s2108_s17 = smov 74  }
0x1ce4   :  { %1610 = vrot.lane.b32.xlu0 %v1606_v25, %s2079_s18  ;;  %s2109_s18 = smov 24   ;;  %v1878_v25 = vsel %vm1219_vm15, 1.0, %v2063_v45  ;;  %vm533_vm15 = vcmask 818968  }
0x1cec   :  { %1655 = vrot.lane.b32.xlu0 %v1898_v36, %s2080_s19  ;;  %s2110_s19 = smov 98   ;;  %v3235_v36 = vld [vmem:[#allocation18_spill] sm:$0xff] }
0x1d4d   :  { %v1694_v52 = vpop.f32.mrf.mxu3 }
0x1d4e   :  { %v1723_v1 = vadd.f32 %v2946_v51, %v1694_v52  ;;  %v360_v51 = vpop.permute.xlu0 %359 }
0x1d50   :  { %v1724_v29 = vmax.f32 %v1723_v1, 0.0 }
0x1d52   :  { %1741 = vmatmul.f32.vlgmr.msra.gmra.mxu3 %v1724_v29 }
0x1d56   :  { %v456_v3 = vpop.permute.xlu0 %455 }
0x1d5e   :  { %v558_v59 = vpop.permute.xlu0 %557 }
0x1dd5   :  { %v1742_v4 = vpop.f32.mrf.mxu3 }
0x1dd6   :  { %v3084_v5 = vadd.f32 %v2996_v34, %v1742_v4 }
0x1dd8   :  { %1751 = vrot.lane.b32.xlu0 %v3084_v5, %s2081_s20  ;;  %1756 = vrot.lane.b32.xlu1 %v3084_v5, %s2057_s9  ;;  %s2085_s9 = smov 114  }
0x1de0   :  { %143 = vrot.lane.b32.xlu1 %v1828_v21, %s2082_s21  ;;  %s2112_s21 = smov 80  }
0x1de8   :  { %239 = vrot.lane.b32.xlu1 %v2369_v44, %s2083_s22  ;;  %v3227_v44 = vld [vmem:[#allocation9_spill] sm:$0xff]  ;;  %s2113_s22 = smov 36  }
0x1df0   :  { %341 = vrot.lane.b32.xlu1 %v2405_v53, %s2084_s2  ;;  %v3220_v53 = vld [vmem:[#allocation14_spill] sm:$0xff]  ;;  %s2114_s2 = smov 101  }
0x1df8   :  { %422 = vrot.lane.b32.xlu1 %v2470_v38, %s2081_s20  ;;  %v3221_v38 = vld [vmem:[#allocation17_spill] sm:$0xff]  ;;  %s2111_s20 = smov 118  }
0x1e00   :  { %467 = vrot.lane.b32.xlu1 %v1843_v43, %s2085_s9  ;;  %s2115_s9 = smov 121  }
0x1e08   :  { %563 = vrot.lane.b32.xlu1 %v2485_v49, %s2086_s3  ;;  %s2116_s3 = smov 86  }
0x1e10   :  { %665 = vrot.lane.b32.xlu1 %v2521_v62, %s2087_s23  ;;  %s2117_s23 = smov 48  }
0x1e18   :  { %746 = vrot.lane.b32.xlu1 %v2586_v7, %s2088_s4  ;;  %s2118_s4 = smov 104  }
0x1e20   :  { %791 = vrot.lane.b32.xlu1 %v1858_v26, %s2089_s24  ;;  %s2119_s24 = smov 124  }
0x1e28   :  { %887 = vrot.lane.b32.xlu1 %v2601_v41, %s2090_s25  ;;  %s2120_s25 = smov 60  }
0x1e30   :  { %989 = vrot.lane.b32.xlu1 %v2637_v20, %s2091_s26  ;;  %v1833_v20 = vsel %vm247_vm4, 1.0, %v2063_v45  ;;  %s2121_s26 = smov 107  }
0x1e38   :  { %1070 = vrot.lane.b32.xlu1 %v2718_v56, %s2092_s27  ;;  %v1714_v56 = vpop.f32.mrf.mxu0  ;;  %s2122_s27 = smov [#allocation2]  }
0x1e40   :  { %1115 = vrot.lane.b32.xlu1 %v1873_v28, %s2093_s28  ;;  %s1813_s28 = sshll.u32 %s2122_s27, 4  ;;  %s1814_s28 = int_to_ptr.vmem [resolvable:$true] %s1813_s28 }
0x1e48   :  { %1211 = vrot.lane.b32.xlu1 %v3220_v53, %s2094_s1 }
0x1e4a   :  { %v1757_v30 = vpop.permute.xlu1 %1756 }
0x1e4b   :  { %vm1759_vm2 = vcmp.gt.f32.partialorder %v3084_v5, %v1757_v30  ;;  %v3236_v5 = vld [vmem:[#allocation21_spill] sm:$0xff] }
0x1e4c   :  { %v1760_v31 = vsel %vm1759_vm2, 1, %v3213_v60  ;;  %v1903_v8 = vsel %vm1759_vm2, 1.0, %v2063_v45  ;;  %vm560_vm2 = vcmask 162944  }
0x1e4d   :  { %1769 = vperm.xlu2 %1974, %v1760_v31  }
0x1e50   :  { %1313 = vrot.lane.b32.xlu1 %v3221_v38, %s2095_s29 }
0x1e52   :  { %v144_v62 = vpop.permute.xlu1 %143 }
0x1e53   :  { %147 = vst.msk [vmem:[#allocation2] sm:$0xff] %vm146_vm8, %v144_v62  ;;  %vm566_vm8 = vcmask 605760  }
0x1e55   :  { %206 = vrot.lane.b32.xlu2 %v3222_v54, %s2096_s0 }
0x1e58   :  { %1394 = vrot.lane.b32.xlu1 %v3223_v55, %s2097_s30 }
0x1e5a   :  { %v240_v9 = vpop.permute.xlu1 %239 }
0x1e5d   :  { %251 = vrot.lane.b32.xlu2 %v1833_v20, %s2098_s7 }
0x1e60   :  { %1439 = vrot.lane.b32.xlu1 %v1888_v61, %s2099_s8 }
0x1e62   :  { %v342_v49 = vpop.permute.xlu1 %341 }
0x1e65   :  { %347 = vrot.lane.b32.xlu2 %v2413_v58, %s2100_s10  ;;  %v1848_v58 = vsel %vm571_vm10, 1.0, %v2063_v45  ;;  %vm236_vm10 = vcmask 64544  }
0x1e68   :  { %1535 = vrot.lane.b32.xlu1 %v2950_v50, %s2101_s11 }
0x1e6d   :  { %449 = vrot.lane.b32.xlu2 %v3226_v22, %s2102_s12 }
0x1e70   :  { %1637 = vrot.lane.b32.xlu1 %v2986_v16, %s2103_s13 }
0x1e75   :  { %530 = vrot.lane.b32.xlu2 %v3227_v44, %s2104_s14 }
0x1e78   :  { %1718 = vrot.lane.b32.xlu1 %v1714_v56, %s2105_s15 }
0x1e7d   :  { %575 = vrot.lane.b32.xlu2 %v1848_v58, %s2106_s5 }
0x1e80   :  { %1763 = vrot.lane.b32.xlu1 %v1903_v8, %s2107_s16 }
0x1e85   :  { %671 = vrot.lane.b32.xlu2 %v2529_v23, %s2108_s17  ;;  %v423_v23 = vpop.permute.xlu1 %422 }
0x1e8d   :  { %773 = vrot.lane.b32.xlu2 %v3229_v13, %s2109_s18  ;;  %v468_v33 = vpop.permute.xlu1 %467 }
0x1e95   :  { %854 = vrot.lane.b32.xlu2 %v3230_v14, %s2110_s19 }
0x1e9d   :  { %899 = vrot.lane.b32.xlu2 %v1863_v18, %s2111_s20 }
0x1ea5   :  { %995 = vrot.lane.b32.xlu2 %v2645_v40, %s2112_s21  ;;  %v564_v40 = vpop.permute.xlu1 %563 }
0x1ea7   :  { %v1770_v16 = vpop.permute.xlu2 %1769 }
0x1ea8   :  { %vm1771_vm4 = vcmp.eq.s32.totalorder %v1770_v16, 1 }
0x1ea9   :  { %v1772_v34 = vsel %vm1771_vm4, %v3059_v27, %v3054_v37  ;;  %v639_v27 = vpop.permute.xlu0 %638  ;;  %vm578_vm4 = vcmask 958368  }
0x1eaa   :  { %v1773_v6 = vadd.f32 %v1772_v34, %v1714_v56 }
0x1eac   :  { %2009 = vtanh.f32 %v1773_v6 }
0x1ead   :  { %1097 = vrot.lane.b32.xlu2 %v3232_v24, %s2113_s22  ;;  %v666_v37 = vpop.permute.xlu1 %665 }
0x1eaf   :  { %v207_v41 = vpop.permute.xlu2 %206 }
0x1eb0   :  { %210 = vst.msk [vmem:[#allocation2] sm:$0xff] %vm209_vm1, %v207_v41  ;;  %vm641_vm1 = vcmask 827168  }
0x1eb1   :  { %237 = vst.msk [vmem:[#allocation2] sm:$0xff] %vm236_vm10, %v234_v11  ;;  %v684_v57 = vpop.permute.xlu0 %683  ;;  %vm668_vm10 = vcmask 195744  }
0x1eb2   :  { %v2010_v39 = vpop.eup %2009  ;;  %243 = vst.msk [vmem:[#allocation2] sm:$0xff] %vm242_vm14, %v240_v9  ;;  %vm3237_vm14 = vcmp.gt.f32.partialorder %v2950_v50, %v3236_v5 }
0x1eb3   :  { %1905 = vmatmul.msk.f32.vlgmr.msra.gmra.mxu0 %vm52_vm0, %v2010_v39  ;;  %vm350_vm0 = vcmask 572960   ;;  %v1893_v21 = vsel %vm3237_vm14, 1.0, %v2063_v45  ;;  %vm1100_vm14 = vcmask 326944  }
0x1eb5   :  { %1178 = vrot.lane.b32.xlu2 %v3233_v2, %s2114_s2  ;;  %v747_v63 = vpop.permute.xlu1 %746 }
0x1eb7   :  { %v252_v42 = vpop.permute.xlu2 %251 }
0x1eb8   :  { %255 = vst.msk [vmem:[#allocation2] sm:$0xff] %vm254_vm3, %v252_v42  ;;  %vm674_vm3 = vcmask 622160  }
0x1eb9   :  { %318 = vst.msk [vmem:[#allocation2] sm:$0xff] %vm317_vm7, %v315_v17  ;;  %vm686_vm7 = vcmask 966568  }
0x1eba   :  { %345 = vst.msk [vmem:[#allocation2] sm:$0xff] %vm344_vm11, %v342_v49  ;;  %vm749_vm11 = vcmask 835368  }
0x1ebd   :  { %1223 = vrot.lane.b32.xlu2 %v1878_v25, %s2115_s9  ;;  %v792_v1 = vpop.permute.xlu1 %791 }
0x1ebf   :  { %v348_v47 = vpop.permute.xlu2 %347 }
0x1ec0   :  { %351 = vst.msk [vmem:[#allocation2] sm:$0xff] %vm350_vm0, %v348_v47  ;;  %vm776_vm0 = vcmask 228544  }
0x1ec1   :  { %363 = vst.msk [vmem:[#allocation2] sm:$0xff] %vm362_vm9, %v360_v51  ;;  %vm782_vm9 = vcmask 638560  }
0x1ec2   :  { %426 = vst.msk [vmem:[#allocation2] sm:$0xff] %vm425_vm5, %v423_v23  ;;  %vm794_vm5 = vcmask 974768  }
0x1ec5   :  { %1319 = vrot.lane.b32.xlu2 %v2777_v35, %s2116_s3  ;;  %v780_v35 = vpop.permute.xlu0 %779  ;;  %v888_v4 = vpop.permute.xlu1 %887 }
0x1ec7   :  { %v450_v48 = vpop.permute.xlu2 %449 }
0x1ec8   :  { %453 = vst.msk [vmem:[#allocation2] sm:$0xff] %vm452_vm13, %v450_v48  ;;  %vm857_vm13 = vcmask 843568  }
0x1ec9   :  { %459 = vst.msk [vmem:[#allocation2] sm:$0xff] %vm458_vm6, %v456_v3  ;;  %vm884_vm6 = vcmask 261344  }
0x1eca   :  { %471 = vst.msk [vmem:[#allocation2] sm:$0xff] %vm470_vm12, %v468_v33  ;;  %vm890_vm12 = vcmask 654960  }
0x1ecd   :  { %1421 = vrot.lane.b32.xlu2 %v3235_v36, %s2117_s23  ;;  %v882_v43 = vpop.permute.xlu0 %881 }
0x1ecf   :  { %v531_v52 = vpop.permute.xlu2 %530 }
0x1ed0   :  { %534 = vst.msk [vmem:[#allocation2] sm:$0xff] %vm533_vm15, %v531_v52  ;;  %vm902_vm15 = vcmask 982968  }
0x1ed1   :  { %561 = vst.msk [vmem:[#allocation2] sm:$0xff] %vm560_vm2, %v558_v59  ;;  %vm965_vm2 = vcmask 851768  }
0x1ed2   :  { %567 = vst.msk [vmem:[#allocation2] sm:$0xff] %vm566_vm8, %v564_v40  ;;  %vm992_vm8 = vcmask 294144  }
0x1ed5   :  { %1502 = vrot.lane.b32.xlu2 %v2979_v32, %s2118_s4  ;;  %v990_v32 = vpop.permute.xlu1 %989  ;;  %v963_v28 = vpop.permute.xlu0 %962 }
0x1ed7   :  { %v576_v29 = vpop.permute.xlu2 %575 }
0x1ed8   :  { %579 = vst.msk [vmem:[#allocation2] sm:$0xff] %vm578_vm4, %v576_v29  ;;  %vm998_vm4 = vcmask 671360  }
0x1ed9   :  { %642 = vst.msk [vmem:[#allocation2] sm:$0xff] %vm641_vm1, %v639_v27  ;;  %vm1010_vm1 = vcmask 991168  }
0x1eda   :  { %669 = vst.msk [vmem:[#allocation2] sm:$0xff] %vm668_vm10, %v666_v37  ;;  %vm1073_vm10 = vcmask 859968  }
0x1edd   :  { %1547 = vrot.lane.b32.xlu2 %v1893_v21, %s2119_s24  ;;  %v1071_v50 = vpop.permute.xlu1 %1070  ;;  %v1008_v30 = vpop.permute.xlu0 %1007 }
0x1edf   :  { %v672_v26 = vpop.permute.xlu2 %671 }
0x1ee0   :  { %675 = vst.msk [vmem:[#allocation2] sm:$0xff] %vm674_vm3, %v672_v26  ;;  %vm1106_vm3 = vcmask 687760  }
0x1ee1   :  { %687 = vst.msk [vmem:[#allocation2] sm:$0xff] %vm686_vm7, %v684_v57  ;;  %vm1118_vm7 = vcmask 999368  }
0x1ee2   :  { %750 = vst.msk [vmem:[#allocation2] sm:$0xff] %vm749_vm11, %v747_v63  ;;  %vm1181_vm11 = vcmask 868168  }
0x1ee5   :  { %1643 = vrot.lane.b32.xlu2 %v2999_v10, %s2096_s0  ;;  %v1116_v31 = vpop.permute.xlu1 %1115  ;;  %v1104_v38 = vpop.permute.xlu0 %1103  ;;  %s1815_s0 = sshll.u32 %s3180_s6, 4  ;;  %s1816_s0 = int_to_ptr.hbm [resolvable:$true] %s1815_s0 }
0x1ee7   :  { %v774_v53 = vpop.permute.xlu2 %773 }
0x1ee8   :  { %777 = vst.msk [vmem:[#allocation2] sm:$0xff] %vm776_vm0, %v774_v53  ;;  %vm1208_vm0 = vcmask 359744  }
0x1ee9   :  { %783 = vst.msk [vmem:[#allocation2] sm:$0xff] %vm782_vm9, %v780_v35  ;;  %vm1214_vm9 = vcmask 704160  }
0x1eea   :  { %795 = vst.msk [vmem:[#allocation2] sm:$0xff] %vm794_vm5, %v792_v1  ;;  %vm1226_vm5 = vcmask 1007568  }
0x1eed   :  { %1745 = vrot.lane.b32.xlu2 %v3066_v46, %s2120_s25  ;;  %v1212_v62 = vpop.permute.xlu1 %1211  ;;  %v1206_v54 = vpop.permute.xlu0 %1205 }
0x1eef   :  { %v855_v45 = vpop.permute.xlu2 %854 }
0x1ef0   :  { %858 = vst.msk [vmem:[#allocation2] sm:$0xff] %vm857_vm13, %v855_v45  ;;  %vm1289_vm13 = vcmask 876368  }
0x1ef1   :  { %885 = vst.msk [vmem:[#allocation2] sm:$0xff] %vm884_vm6, %v882_v43  ;;  %vm1316_vm6 = vcmask 392544  }
0x1ef2   :  { %891 = vst.msk [vmem:[#allocation2] sm:$0xff] %vm890_vm12, %v888_v4  ;;  %vm1322_vm12 = vcmask 720560  }
0x1ef5   :  { %v1314_v7 = vpop.permute.xlu1 %1313  ;;  %v1287_v20 = vpop.permute.xlu0 %1286 }
0x1ef7   :  { %v900_v10 = vpop.permute.xlu2 %899 }
0x1ef8   :  { %903 = vst.msk [vmem:[#allocation2] sm:$0xff] %vm902_vm15, %v900_v10  ;;  %vm1334_vm15 = vcmask 1015768  }
0x1ef9   :  { %966 = vst.msk [vmem:[#allocation2] sm:$0xff] %vm965_vm2, %v963_v28  ;;  %vm1397_vm2 = vcmask 884568  }
0x1efa   :  { %993 = vst.msk [vmem:[#allocation2] sm:$0xff] %vm992_vm8, %v990_v32  ;;  %vm1424_vm8 = vcmask 425344  }
0x1efd   :  { %v1395_v61 = vpop.permute.xlu1 %1394  ;;  %v1332_v44 = vpop.permute.xlu0 %1331 }
0x1eff   :  { %v996_v46 = vpop.permute.xlu2 %995 }
0x1f00   :  { %999 = vst.msk [vmem:[#allocation2] sm:$0xff] %vm998_vm4, %v996_v46  ;;  %vm1430_vm4 = vcmask 736960  }
0x1f01   :  { %1011 = vst.msk [vmem:[#allocation2] sm:$0xff] %vm1010_vm1, %v1008_v30  ;;  %vm1442_vm1 = vcmask 1023968  }
0x1f02   :  { %1074 = vst.msk [vmem:[#allocation2] sm:$0xff] %vm1073_vm10, %v1071_v50  ;;  %vm1505_vm10 = vcmask 892768  }
0x1f05   :  { %v1440_v15 = vpop.permute.xlu1 %1439  ;;  %v1428_v58 = vpop.permute.xlu0 %1427 }
0x1f07   :  { %v1098_v55 = vpop.permute.xlu2 %1097 }
0x1f08   :  { %1101 = vst.msk [vmem:[#allocation2] sm:$0xff] %vm1100_vm14, %v1098_v55  ;;  %vm1532_vm14 = vcmask 458144  }
0x1f09   :  { %1107 = vst.msk [vmem:[#allocation2] sm:$0xff] %vm1106_vm3, %v1104_v38  ;;  %vm1538_vm3 = vcmask 753360  }
0x1f0a   :  { %1119 = vst.msk [vmem:[#allocation2] sm:$0xff] %vm1118_vm7, %v1116_v31  ;;  %vm1550_vm7 = vcmask 1032168  }
0x1f0d   :  { %v1536_v9 = vpop.permute.xlu1 %1535  ;;  %v1530_v11 = vpop.permute.xlu0 %1529 }
0x1f0f   :  { %v1179_v60 = vpop.permute.xlu2 %1178 }
0x1f10   :  { %1182 = vst.msk [vmem:[#allocation2] sm:$0xff] %vm1181_vm11, %v1179_v60  ;;  %vm1613_vm11 = vcmask 900968  }
0x1f11   :  { %1209 = vst.msk [vmem:[#allocation2] sm:$0xff] %vm1208_vm0, %v1206_v54  ;;  %vm1640_vm0 = vcmask 490944  }
0x1f12   :  { %1215 = vst.msk [vmem:[#allocation2] sm:$0xff] %vm1214_vm9, %v1212_v62  ;;  %vm1646_vm9 = vcmask 769760  }
0x1f15   :  { %v1638_v49 = vpop.permute.xlu1 %1637  ;;  %v1611_v14 = vpop.permute.xlu0 %1610 }
0x1f17   :  { %v1224_v22 = vpop.permute.xlu2 %1223 }
0x1f18   :  { %1227 = vst.msk [vmem:[#allocation2] sm:$0xff] %vm1226_vm5, %v1224_v22  ;;  %vm1658_vm5 = vcmask 1040368  }
0x1f19   :  { %1290 = vst.msk [vmem:[#allocation2] sm:$0xff] %vm1289_vm13, %v1287_v20  ;;  %vm1721_vm13 = vcmask 909168  }
0x1f1a   :  { %1317 = vst.msk [vmem:[#allocation2] sm:$0xff] %vm1316_vm6, %v1314_v7  ;;  %vm1748_vm6 = vcmask 523744  }
0x1f1d   :  { %v1719_v19 = vpop.permute.xlu1 %1718  ;;  %v1656_v23 = vpop.permute.xlu0 %1655 }
0x1f1f   :  { %v1320_v56 = vpop.permute.xlu2 %1319 }
0x1f20   :  { %1323 = vst.msk [vmem:[#allocation2] sm:$0xff] %vm1322_vm12, %v1320_v56  ;;  %vm1754_vm12 = vcmask 786160  }
0x1f21   :  { %1335 = vst.msk [vmem:[#allocation2] sm:$0xff] %vm1334_vm15, %v1332_v44  ;;  %vm1766_vm15 = vcmask 1048568  }
0x1f22   :  { %1398 = vst.msk [vmem:[#allocation2] sm:$0xff] %vm1397_vm2, %v1395_v61  ;;  %vm1806_vm2 = vcmask 917368  }
0x1f25   :  { %v1752_v16 = vpop.permute.xlu0 %1751  ;;  %v1764_v33 = vpop.permute.xlu1 %1763 }
0x1f27   :  { %v1422_v8 = vpop.permute.xlu2 %1421 }
0x1f28   :  { %1425 = vst.msk [vmem:[#allocation2] sm:$0xff] %vm1424_vm8, %v1422_v8 }
0x1f29   :  { %1431 = vst.msk [vmem:[#allocation2] sm:$0xff] %vm1430_vm4, %v1428_v58 }
0x1f2a   :  { %1443 = vst.msk [vmem:[#allocation2] sm:$0xff] %vm1442_vm1, %v1440_v15 }
0x1f2f   :  { %v1503_v12 = vpop.permute.xlu2 %1502 }
0x1f30   :  { %1506 = vst.msk [vmem:[#allocation2] sm:$0xff] %vm1505_vm10, %v1503_v12  ;;  %v1799_v13 = vpop.f32.mrf.mxu0 }
0x1f31   :  { %1533 = vst.msk [vmem:[#allocation2] sm:$0xff] %vm1532_vm14, %v1530_v11  ;;  %1803 = vrot.lane.b32.xlu2 %v1799_v13, %s2121_s26 }
0x1f32   :  { %1539 = vst.msk [vmem:[#allocation2] sm:$0xff] %vm1538_vm3, %v1536_v9 }
0x1f37   :  { %v1548_v17 = vpop.permute.xlu2 %1547 }
0x1f38   :  { %1551 = vst.msk [vmem:[#allocation2] sm:$0xff] %vm1550_vm7, %v1548_v17 }
0x1f39   :  { %1614 = vst.msk [vmem:[#allocation2] sm:$0xff] %vm1613_vm11, %v1611_v14 }
0x1f3a   :  { %1641 = vst.msk [vmem:[#allocation2] sm:$0xff] %vm1640_vm0, %v1638_v49 }
0x1f3f   :  { %v1644_v18 = vpop.permute.xlu2 %1643 }
0x1f40   :  { %1647 = vst.msk [vmem:[#allocation2] sm:$0xff] %vm1646_vm9, %v1644_v18 }
0x1f41   :  { %1659 = vst.msk [vmem:[#allocation2] sm:$0xff] %vm1658_vm5, %v1656_v23 }
0x1f42   :  { %1722 = vst.msk [vmem:[#allocation2] sm:$0xff] %vm1721_vm13, %v1719_v19 }
0x1f47   :  { %v1746_v51 = vpop.permute.xlu2 %1745 }
0x1f48   :  { %1749 = vst.msk [vmem:[#allocation2] sm:$0xff] %vm1748_vm6, %v1746_v51 }
0x1f49   :  { %1755 = vst.msk [vmem:[#allocation2] sm:$0xff] %vm1754_vm12, %v1752_v16 }
0x1f4a   :  { %1767 = vst.msk [vmem:[#allocation2] sm:$0xff] %vm1766_vm15, %v1764_v33 }
0x1f8b   :  { %v1804_v34 = vpop.permute.xlu2 %1803 }
0x1f8c   :  { %1807 = vst.msk [vmem:[#allocation2] sm:$0xff] %vm1806_vm2, %v1804_v34 }
0x1f8d   :  { %1818 = dma.vmem_to_hbm [thread:$0]  %s1814_s28, 128, %s1816_s0, [#allocation3]  }
0x1f8e   :  { %2055 = dma.done.wait [#allocation3], 128  }
0x1f8f   :  { %2056 = vsyncadd [#allocation3], 4294967168 }
0x1f90   :  { %1823 = vsyncpa [#allocation3], 1 }

</bundles_post_ra>
